<compile_context>
chip_gen: v7x
topology: tpu7x:2x2x1
jax: 0.10.0
libtpu: 0.0.40
codegen_flags: <defaults>
</compile_context>

<pallas_src>
import functools

import numpy as np
import jax
import jax.numpy as jnp
from jax import lax
from jax.experimental import pallas as pl
from jax.experimental.pallas import tpu as pltpu


# ------------------------------- fused kernel ------------------------------- #

def _fagcn_fused_kernel(eps_ref, x_ref, w1_ref, b1_ref, att_ref, adj_ref,
                        w2_ref, b2_ref, pool_ref, *rest,
                        num_layers, tm, n_valid, adj_resident, with_hout):
    if with_hout:
        emb_ref, hout_ref = rest[0], rest[1]
        h_pp, h_bf, raw_ref, sl_ref, sr_ref = rest[2:]
    else:
        emb_ref, hout_ref = rest[0], None
        h_pp, h_bf, raw_ref, sl_ref, sr_ref = rest[1:]

    npad, hpad = raw_ref.shape
    l = pl.program_id(0)                     # layer index
    i = pl.program_id(1)                     # dst-node tile index
    n_tiles = pl.num_programs(1)
    eps = eps_ref[0, 0]

    cur = l % 2                              # ping-pong read slot for layer l
    nxt = 1 - cur                            # ping-pong write slot

    # ---- stage 0: t1 + relu once; padded rows forced to exactly zero ----
    @pl.when((l == 0) & (i == 0))
    def _():
        h0 = jnp.dot(x_ref[...], w1_ref[...],
                     preferred_element_type=jnp.float32)
        h0 = jnp.maximum(h0 + b1_ref[...], 0.0)
        row_ids = lax.broadcasted_iota(jnp.int32, h0.shape, 0)
        h0 = jnp.where(row_ids < n_valid, h0, 0.0)
        raw_ref[...] = h0
        h_pp[pl.ds(0, npad), :] = h0

    # ---- per-layer prep (once per layer): scores + single bf16 cast of h ----
    @pl.when(i == 0)
    def _():
        src_off = pl.multiple_of(cur * npad, npad)
        h = h_pp[pl.ds(src_off, npad), :]                     # [Np, Hp] f32
        h_bf[...] = h.astype(jnp.bfloat16)                    # once per layer
        att = att_ref[...]                                    # [8, Hp]
        att_l = att[0:1, :]                                   # [1, Hp]
        att_r = att[1:2, :]                                   # [1, Hp]
        # dst scores: VPU lane reduction -> (Np, 1)
        sl_ref[...] = jnp.sum(h * att_l, axis=-1, keepdims=True)
        # src scores: produced directly as a lane-dense (1, Np) row (A @ B^T)
        sr_ref[...] = lax.dot_general(att_r, h, (((1,), (1,)), ((), ())),
                                      preferred_element_type=jnp.float32)

    # ---- FAConv update for this dst tile ----
    row0 = pl.multiple_of(i * tm, tm)
    if adj_resident:
        adj_tile = adj_ref[pl.ds(row0, tm), :]                # resident bf16 adj
    else:
        adj_tile = adj_ref[...]                               # streamed bf16 tile
    alpha = jnp.tanh(sl_ref[pl.ds(row0, tm), :] + sr_ref[...])   # [tm, Np] f32
    w = alpha.astype(jnp.bfloat16) * adj_tile                    # edge mask+norm
    agg = jnp.dot(w, h_bf[...], preferred_element_type=jnp.float32)  # [tm, Hp]
    dst_off = pl.multiple_of(nxt * npad + row0, tm)
    h_pp[pl.ds(dst_off, tm), :] = eps * raw_ref[pl.ds(row0, tm), :] + agg

    # ---- epilogue (last grid step): t2 linear + global_add_pool ----
    @pl.when((l == num_layers - 1) & (i == n_tiles - 1))
    def _():
        fin_off = (num_layers % 2) * npad                     # static slot
        h_fin = h_pp[pl.ds(fin_off, npad), :]
        h2 = jnp.dot(h_fin, w2_ref[...],
                     preferred_element_type=jnp.float32) + b2_ref[...]
        if with_hout:
            hout_ref[...] = h2
        emb_ref[...] = jnp.dot(pool_ref[...], h2,
                               preferred_element_type=jnp.float32)


# ------------------------------ forward wrapper ------------------------------ #

def _round_up(x, m):
    return ((x + m - 1) // m) * m


def fagcn_forward(params, x, edge_index, batch, num_graphs, eps, num_layers,
                  reconstruct=0.0, tm=128):
    assert num_layers >= 1
    n, f = x.shape
    h_dim = params["t1_w"].shape[1]

    npad = _round_up(max(n, 1), 128)
    fpad = _round_up(max(f, 1), 128)
    hpad = _round_up(max(h_dim, 1), 128)
    bpad = _round_up(max(num_graphs, 1), 8)
    tm = min(tm, npad)
    assert npad % tm == 0
    n_tiles = npad // tm
    with_hout = (reconstruct != 0.0)

    # dense gcn_norm adjacency (add_self_loops=False), stored in bf16:
    #   adj[dst, src] = 1/sqrt(deg_dst * deg_src)
    row, col = edge_index[0], edge_index[1]                 # row=src, col=dst
    deg = jnp.zeros((n,), jnp.float32).at[col].add(1.0)
    dis = jnp.where(deg > 0, 1.0 / jnp.sqrt(jnp.where(deg > 0, deg, 1.0)), 0.0)
    norm = dis[row] * dis[col]
    adj_p = (jnp.zeros((npad, npad), jnp.float32)
             .at[col, row].add(norm)).astype(jnp.bfloat16)

    # one-hot pooling matrix [B, N] for global_add_pool
    pool_p = jnp.zeros((bpad, npad), jnp.float32).at[batch, jnp.arange(n)].set(1.0)

    # zero-pad to lane/sublane-friendly shapes (layout plumbing only)
    x_p = jnp.zeros((npad, fpad), jnp.float32).at[:n, :f].set(x)
    w1_p = jnp.zeros((fpad, hpad), jnp.float32).at[:f, :h_dim].set(params["t1_w"])
    b1_p = jnp.zeros((1, hpad), jnp.float32).at[:, :h_dim].set(params["t1_b"])
    w2_p = jnp.zeros((hpad, hpad), jnp.float32).at[:h_dim, :h_dim].set(params["t2_w"])
    b2_p = jnp.zeros((1, hpad), jnp.float32).at[:, :h_dim].set(params["t2_b"])

    # per-layer attention vectors packed as rows: row 0 = att_l, row 1 = att_r
    att_l = jnp.stack(params["att_l"])[..., 0]              # [L, H]
    att_r = jnp.stack(params["att_r"])[..., 0]              # [L, H]
    att_p = jnp.zeros((8 * num_layers, hpad), jnp.float32)
    att_p = att_p.at[8 * jnp.arange(num_layers), :h_dim].set(att_l)
    att_p = att_p.at[8 * jnp.arange(num_layers) + 1, :h_dim].set(att_r)

    eps_arr = jnp.full((1, 1), eps, jnp.float32)            # SMEM runtime scalar

    # adjacency residency decision (bf16): resident if it fits an 8 MiB budget
    adj_resident = (npad * npad * 2) <= (8 << 20)
    if adj_resident:
        adj_spec = pl.BlockSpec((npad, npad), lambda l, i: (0, 0))
        adj_vmem = npad * npad * 2
    else:
        adj_spec = pl.BlockSpec((tm, npad), lambda l, i: (i, 0),
                                pipeline_mode=pl.Buffered(3))
        adj_vmem = 3 * tm * npad * 2

    # explicit VMEM budget for the resident set (+50% headroom, clamp to 64 MiB)
    vmem_bytes = (
        npad * fpad * 4 + fpad * hpad * 4 + hpad * 4        # x, w1, b1
        + 2 * 8 * hpad * 4                                  # att (double buffer)
        + adj_vmem                                          # adjacency
        + hpad * hpad * 4 + hpad * 4                        # w2, b2
        + bpad * npad * 4                                   # pool
        + bpad * hpad * 4                                   # emb out block
        + (npad * hpad * 4 if with_hout else 0)             # hout out block
        + 2 * npad * hpad * 4                               # h ping-pong
        + npad * hpad * 2                                   # h bf16
        + npad * hpad * 4                                   # raw residual
        + 2 * npad * 4)                                     # sl, sr
    vmem_limit = int(min(max(int(vmem_bytes * 1.5) + (2 << 20), 32 << 20), 64 << 20))

    in_specs = [
        pl.BlockSpec(memory_space=pltpu.MemorySpace.SMEM),       # eps
        pl.BlockSpec((npad, fpad), lambda l, i: (0, 0)),         # x (resident)
        pl.BlockSpec((fpad, hpad), lambda l, i: (0, 0)),         # t1 W
        pl.BlockSpec((1, hpad), lambda l, i: (0, 0)),            # t1 b
        pl.BlockSpec((8, hpad), lambda l, i: (l, 0)),            # att[l]
        adj_spec,                                                # adjacency (bf16)
        pl.BlockSpec((hpad, hpad), lambda l, i: (0, 0)),         # t2 W
        pl.BlockSpec((1, hpad), lambda l, i: (0, 0)),            # t2 b
        pl.BlockSpec((bpad, npad), lambda l, i: (0, 0)),         # pool one-hot
    ]
    emb_spec = pl.BlockSpec((bpad, hpad), lambda l, i: (0, 0))
    if with_hout:
        out_shape = (jax.ShapeDtypeStruct((bpad, hpad), jnp.float32),
                     jax.ShapeDtypeStruct((npad, hpad), jnp.float32))
        out_specs = (emb_spec, pl.BlockSpec((npad, hpad), lambda l, i: (0, 0)))
    else:
        out_shape = jax.ShapeDtypeStruct((bpad, hpad), jnp.float32)
        out_specs = emb_spec

    scratch_shapes = [
        pltpu.VMEM((2 * npad, hpad), jnp.float32),   # h ping-pong (slots 0/1)
        pltpu.VMEM((npad, hpad), jnp.bfloat16),      # bf16 h for the MXU
        pltpu.VMEM((npad, hpad), jnp.float32),       # raw residual
        pltpu.VMEM((npad, 1), jnp.float32),          # s_l column
        pltpu.VMEM((1, npad), jnp.float32),          # s_r row
    ]

    kernel = functools.partial(_fagcn_fused_kernel,
                               num_layers=num_layers, tm=tm, n_valid=n,
                               adj_resident=adj_resident, with_hout=with_hout)
    outs = pl.pallas_call(
        kernel,
        out_shape=out_shape,
        grid_spec=pltpu.PrefetchScalarGridSpec(
            num_scalar_prefetch=0,
            grid=(num_layers, n_tiles),
            in_specs=in_specs,
            out_specs=out_specs,
            scratch_shapes=scratch_shapes),
        compiler_params=pltpu.CompilerParams(
            dimension_semantics=("arbitrary", "arbitrary"),
            vmem_limit_bytes=vmem_limit),
    )(eps_arr, x_p, w1_p, b1_p, att_p, adj_p, w2_p, b2_p, pool_p)

    if with_hout:
        emb_p, hout_p = outs
        return emb_p[:num_graphs, :h_dim], hout_p[:n, :h_dim]
    return outs[:num_graphs, :h_dim]


# --------------------------- pure-JAX reference ----------------------------- #

def fagcn_reference(params, x, edge_index, batch, num_graphs, eps, num_layers):
    row, col = edge_index[0], edge_index[1]
    n = x.shape[0]
    deg = jnp.zeros((n,), jnp.float32).at[col].add(1.0)
    dis = jnp.where(deg > 0, 1.0 / jnp.sqrt(jnp.where(deg > 0, deg, 1.0)), 0.0)
    norm = dis[row] * dis[col]
    h = jax.nn.relu(x @ params["t1_w"] + params["t1_b"][0])
    raw = h
    for i in range(num_layers):
        sl = (h @ params["att_l"][i])[:, 0]
        sr = (h @ params["att_r"][i])[:, 0]
        alpha = jnp.tanh(sl[col] + sr[row])
        msg = (alpha * norm)[:, None] * h[row]
        agg = jnp.zeros_like(h).at[col].add(msg)
        h = eps * raw + agg
    h2 = h @ params["t2_w"] + params["t2_b"][0]
    emb = jnp.zeros((num_graphs, h2.shape[1]), jnp.float32).at[batch].add(h2)
    return emb, h2


# ---------------------------------- main ------------------------------------ #

def xavier_normal(key, shape, gain):
    fan_in, fan_out = shape
    std = gain * (2.0 / (fan_in + fan_out)) ** 0.5
    return std * jax.random.normal(key, shape, jnp.float32)


if __name__ == "__main__":
    # small config: 2 graphs of 8 nodes each
    NUM_FEATURES, HIDDEN, NUM_LAYERS = 8, 32, 2
    EPS = 0.3
    NODES_PER_GRAPH, NUM_GRAPHS = 8, 2
    N = NODES_PER_GRAPH * NUM_GRAPHS

    key = jax.random.PRNGKey(0)
    ks = jax.random.split(key, 5 + 2 * NUM_LAYERS)

    params = {
        # stored already transposed ([in, out]) for x @ W
        "t1_w": xavier_normal(ks[0], (NUM_FEATURES, HIDDEN), 1.414),
        "t1_b": 0.1 * jax.random.normal(ks[1], (1, HIDDEN), jnp.float32),
        "t2_w": xavier_normal(ks[2], (HIDDEN, HIDDEN), 1.414),
        "t2_b": 0.1 * jax.random.normal(ks[3], (1, HIDDEN), jnp.float32),
        "att_l": [xavier_normal(ks[5 + 2 * i], (HIDDEN, 1), 1.0)
                  for i in range(NUM_LAYERS)],
        "att_r": [xavier_normal(ks[6 + 2 * i], (HIDDEN, 1), 1.0)
                  for i in range(NUM_LAYERS)],
    }

    # node features
    x = jax.random.normal(ks[4], (N, NUM_FEATURES), jnp.float32)

    # bidirectional ring edges within each graph
    src, dst = [], []
    for g in range(NUM_GRAPHS):
        base = g * NODES_PER_GRAPH
        for i in range(NODES_PER_GRAPH):
            a = base + i
            b = base + (i + 1) % NODES_PER_GRAPH
            src += [a, b]
            dst += [b, a]
    edge_index = jnp.array(np.stack([src, dst]), dtype=jnp.int32)   # [2, E]
    batch = jnp.array(
        sum([[g] * NODES_PER_GRAPH for g in range(NUM_GRAPHS)], []),
        dtype=jnp.int32)

    # reconstruct != 0 path: (graph_emb, node_out)
    graph_emb, h_out = fagcn_forward(params, x, edge_index, batch, NUM_GRAPHS,
                                     EPS, NUM_LAYERS, reconstruct=1.0)
    graph_emb = jax.block_until_ready(graph_emb)
    h_out = jax.block_until_ready(h_out)

    # reconstruct == 0 path: graph_emb only (no hout output block)
    graph_emb_only = jax.block_until_ready(
        fagcn_forward(params, x, edge_index, batch, NUM_GRAPHS,
                      EPS, NUM_LAYERS, reconstruct=0.0))

    ref_emb, ref_h = fagcn_reference(params, x, edge_index, batch, NUM_GRAPHS,
                                     EPS, NUM_LAYERS)
    ref_emb = jax.block_until_ready(ref_emb)

    # bf16 adjacency / aggregation -> slightly relaxed absolute tolerance
    if not np.allclose(np.asarray(graph_emb), np.asarray(ref_emb),
                       rtol=2e-2, atol=5e-2):
        raise AssertionError("Pallas FAGCN graph_emb mismatch vs JAX reference")
    if not np.allclose(np.asarray(h_out), np.asarray(ref_h),
                       rtol=2e-2, atol=5e-2):
        raise AssertionError("Pallas FAGCN node output mismatch vs JAX reference")
    if not np.allclose(np.asarray(graph_emb_only), np.asarray(ref_emb),
                       rtol=2e-2, atol=5e-2):
        raise AssertionError("Pallas FAGCN reconstruct=0 mismatch vs JAX reference")

    print("KERNEL_OK")
</pallas_src>

<mosaic_0001>
module attributes {stable_mosaic.version = 11 : i64} {
  func.func @_fagcn_fused_kernel(%arg0: i32, %arg1: i32, %arg2: memref<1x1xf32, #tpu.memory_space<smem>>, %arg3: memref<128x128xf32, #tpu.memory_space<vmem>>, %arg4: memref<128x128xf32, #tpu.memory_space<vmem>>, %arg5: memref<1x128xf32, #tpu.memory_space<vmem>>, %arg6: memref<8x128xf32, #tpu.memory_space<vmem>>, %arg7: memref<128x128xbf16, #tpu.memory_space<vmem>>, %arg8: memref<128x128xf32, #tpu.memory_space<vmem>>, %arg9: memref<1x128xf32, #tpu.memory_space<vmem>>, %arg10: memref<8x128xf32, #tpu.memory_space<vmem>>, %arg11: memref<8x128xf32, #tpu.memory_space<vmem>>, %arg12: memref<128x128xf32, #tpu.memory_space<vmem>>, %arg13: memref<256x128xf32, #tpu.memory_space<vmem>>, %arg14: memref<128x128xbf16, #tpu.memory_space<vmem>>, %arg15: memref<128x128xf32, #tpu.memory_space<vmem>>, %arg16: memref<128x1xf32, #tpu.memory_space<vmem>>, %arg17: memref<1x128xf32, #tpu.memory_space<vmem>>) attributes {dimension_semantics = [#tpu.dimension_semantics<arbitrary>, #tpu.dimension_semantics<arbitrary>], iteration_bounds = array<i64: 2, 1>, scalar_prefetch = 0 : i64, scratch_operands = 5 : i64, tpu.core_type = #tpu.core_type<tc>, window_params = [{transform_indices = @transform_0, window_bounds = array<i64: 1, 1>}, {pipeline_mode = #tpu.pipeline_mode<synchronous>, transform_indices = @transform_1, window_bounds = array<i64: 128, 128>}, {pipeline_mode = #tpu.pipeline_mode<synchronous>, transform_indices = @transform_2, window_bounds = array<i64: 128, 128>}, {pipeline_mode = #tpu.pipeline_mode<synchronous>, transform_indices = @transform_3, window_bounds = array<i64: 1, 128>}, {transform_indices = @transform_4, window_bounds = array<i64: 8, 128>}, {pipeline_mode = #tpu.pipeline_mode<synchronous>, transform_indices = @transform_5, window_bounds = array<i64: 128, 128>}, {pipeline_mode = #tpu.pipeline_mode<synchronous>, transform_indices = @transform_6, window_bounds = array<i64: 128, 128>}, {pipeline_mode = #tpu.pipeline_mode<synchronous>, transform_indices = @transform_7, window_bounds = array<i64: 1, 128>}, {pipeline_mode = #tpu.pipeline_mode<synchronous>, transform_indices = @transform_8, window_bounds = array<i64: 8, 128>}, {pipeline_mode = #tpu.pipeline_mode<synchronous>, transform_indices = @transform_9, window_bounds = array<i64: 8, 128>}, {pipeline_mode = #tpu.pipeline_mode<synchronous>, transform_indices = @transform_10, window_bounds = array<i64: 128, 128>}]} {
    %c0 = arith.constant 0 : index
    %c0_0 = arith.constant 0 : index
    %0 = memref.load %arg2[%c0, %c0_0] : memref<1x1xf32, #tpu.memory_space<smem>>
    %c2_i32 = arith.constant 2 : i32
    %c0_i32 = arith.constant 0 : i32
    %1 = arith.cmpi eq, %c2_i32, %c0_i32 : i32
    %c1_i32 = arith.constant 1 : i32
    %2 = arith.select %1, %c1_i32, %c2_i32 : i32
    %3 = arith.remsi %arg0, %2 : i32
    %c0_i32_1 = arith.constant 0 : i32
    %4 = arith.cmpi ne, %3, %c0_i32_1 : i32
    %c0_i32_2 = arith.constant 0 : i32
    %5 = arith.cmpi slt, %3, %c0_i32_2 : i32
    %c0_i32_3 = arith.constant 0 : i32
    %6 = arith.cmpi slt, %2, %c0_i32_3 : i32
    %7 = arith.xori %5, %6 : i1
    %8 = arith.andi %7, %4 : i1
    %9 = arith.addi %3, %2 : i32
    %10 = arith.select %8, %9, %3 : i32
    %c1_i32_4 = arith.constant 1 : i32
    %11 = arith.subi %c1_i32_4, %10 : i32
    %c0_i32_5 = arith.constant 0 : i32
    %12 = arith.cmpi eq, %arg0, %c0_i32_5 : i32
    %c0_i32_6 = arith.constant 0 : i32
    %13 = arith.cmpi eq, %arg1, %c0_i32_6 : i32
    %14 = arith.andi %12, %13 : i1
    %15 = arith.extui %14 : i1 to i32
    %c0_i32_7 = arith.constant 0 : i32
    %16 = arith.cmpi ne, %15, %c0_i32_7 : i32
    scf.if %16 {
      %c0_22 = arith.constant 0 : index
      %c0_23 = arith.constant 0 : index
      %50 = vector.load %arg3[%c0_22, %c0_23] : memref<128x128xf32, #tpu.memory_space<vmem>>, vector<128x128xf32>
      %c0_24 = arith.constant 0 : index
      %c0_25 = arith.constant 0 : index
      %51 = vector.load %arg4[%c0_24, %c0_25] : memref<128x128xf32, #tpu.memory_space<vmem>>, vector<128x128xf32>
      %cst_26 = arith.constant dense<0.000000e+00> : vector<128x128xf32>
      %52 = tpu.matmul %50, %51, %cst_26 {dimension_numbers = #tpu.dot_dimension_numbers<[1], [0], [0], [1], [0, 0, 1, 1], [], []>} : vector<128x128xf32>, vector<128x128xf32>, vector<128x128xf32> -> vector<128x128xf32>
      %c0_27 = arith.constant 0 : index
      %c0_28 = arith.constant 0 : index
      %53 = vector.load %arg5[%c0_27, %c0_28] : memref<1x128xf32, #tpu.memory_space<vmem>>, vector<1x128xf32>
      %54 = vector.broadcast %53 : vector<1x128xf32> to vector<128x128xf32>
      %55 = arith.addf %52, %54 : vector<128x128xf32>
      %cst_29 = arith.constant 0.000000e+00 : f32
      %56 = vector.broadcast %cst_29 : f32 to vector<128x128xf32>
      %57 = arith.maximumf %55, %56 : vector<128x128xf32>
      %58 = tpu.iota {dimensions = array<i32: 0>} : vector<128x128xi32>
      %c16_i32 = arith.constant 16 : i32
      %59 = vector.broadcast %c16_i32 : i32 to vector<128x128xi32>
      %60 = arith.cmpi slt, %58, %59 : vector<128x128xi32>
      %cst_30 = arith.constant 0.000000e+00 : f32
      %61 = vector.broadcast %cst_30 : f32 to vector<128x128xf32>
      %62 = arith.select %60, %57, %61 : vector<128x128xi1>, vector<128x128xf32>
      %c0_31 = arith.constant 0 : index
      %c0_32 = arith.constant 0 : index
      %63 = vector.load %arg15[%c0_31, %c0_32] : memref<128x128xf32, #tpu.memory_space<vmem>>, vector<128x128xf32>
      tpu.vector_store %arg15[%c0_31, %c0_32], %62 {strides = array<i32>} : memref<128x128xf32, #tpu.memory_space<vmem>>, vector<128x128xf32>,
      %c0_33 = arith.constant 0 : index
      %c0_34 = arith.constant 0 : index
      %64 = vector.load %arg13[%c0_33, %c0_34] : memref<256x128xf32, #tpu.memory_space<vmem>>, vector<128x128xf32>
      tpu.vector_store %arg13[%c0_33, %c0_34], %62 {strides = array<i32>} : memref<256x128xf32, #tpu.memory_space<vmem>>, vector<128x128xf32>,
    } else {
    }
    %c0_i32_8 = arith.constant 0 : i32
    %17 = arith.cmpi eq, %arg1, %c0_i32_8 : i32
    %18 = arith.extui %17 : i1 to i32
    %c0_i32_9 = arith.constant 0 : i32
    %19 = arith.cmpi ne, %18, %c0_i32_9 : i32
    scf.if %19 {
      %c128_i32_22 = arith.constant 128 : i32
      %50 = arith.muli %10, %c128_i32_22 : i32
      %51 = tpu.assume_multiple %50, 128 : i32
      %52 = arith.index_cast %51 : i32 to index
      %c0_23 = arith.constant 0 : index
      %53 = vector.load %arg13[%52, %c0_23] : memref<256x128xf32, #tpu.memory_space<vmem>>, vector<128x128xf32>
      %54 = arith.truncf %53 : vector<128x128xf32> to vector<128x128xbf16>
      %c0_24 = arith.constant 0 : index
      %c0_25 = arith.constant 0 : index
      %55 = vector.load %arg14[%c0_24, %c0_25] : memref<128x128xbf16, #tpu.memory_space<vmem>>, vector<128x128xbf16>
      tpu.vector_store %arg14[%c0_24, %c0_25], %54 {strides = array<i32>} : memref<128x128xbf16, #tpu.memory_space<vmem>>, vector<128x128xbf16>,
      %c0_26 = arith.constant 0 : index
      %c0_27 = arith.constant 0 : index
      %56 = vector.load %arg6[%c0_26, %c0_27] : memref<8x128xf32, #tpu.memory_space<vmem>>, vector<8x128xf32>
      %57 = vector.extract_strided_slice %56 {offsets = [0, 0], sizes = [1, 128], strides = [1, 1]} : vector<8x128xf32> to vector<1x128xf32>
      %58 = vector.extract_strided_slice %56 {offsets = [1, 0], sizes = [1, 128], strides = [1, 1]} : vector<8x128xf32> to vector<1x128xf32>
      %59 = vector.broadcast %57 : vector<1x128xf32> to vector<128x128xf32>
      %60 = arith.mulf %53, %59 : vector<128x128xf32>
      %cst_28 = arith.constant dense<0.000000e+00> : vector<128xf32>
      %61 = vector.multi_reduction <add>, %60, %cst_28 [1] : vector<128x128xf32> to vector<128xf32>
      %62 = vector.shape_cast %61 : vector<128xf32> to vector<128x1xf32>
      %c0_29 = arith.constant 0 : index
      %c0_30 = arith.constant 0 : index
      %63 = vector.load %arg16[%c0_29, %c0_30] : memref<128x1xf32, #tpu.memory_space<vmem>>, vector<128x1xf32>
      tpu.vector_store %arg16[%c0_29, %c0_30], %62 {strides = array<i32>} : memref<128x1xf32, #tpu.memory_space<vmem>>, vector<128x1xf32>,
      %cst_31 = arith.constant dense<0.000000e+00> : vector<1x128xf32>
      %64 = tpu.matmul %58, %53, %cst_31 {dimension_numbers = #tpu.dot_dimension_numbers<[1], [1], [0], [0], [0, 0, 1, 0], [], []>} : vector<1x128xf32>, vector<128x128xf32>, vector<1x128xf32> -> vector<1x128xf32>
      %c0_32 = arith.constant 0 : index
      %c0_33 = arith.constant 0 : index
      %65 = vector.load %arg17[%c0_32, %c0_33] : memref<1x128xf32, #tpu.memory_space<vmem>>, vector<1x128xf32>
      tpu.vector_store %arg17[%c0_32, %c0_33], %64 {strides = array<i32>} : memref<1x128xf32, #tpu.memory_space<vmem>>, vector<1x128xf32>,
    } else {
    }
    %c128_i32 = arith.constant 128 : i32
    %20 = arith.muli %arg1, %c128_i32 : i32
    %21 = tpu.assume_multiple %20, 128 : i32
    %22 = arith.index_cast %21 : i32 to index
    %c0_10 = arith.constant 0 : index
    %23 = vector.load %arg7[%22, %c0_10] : memref<128x128xbf16, #tpu.memory_space<vmem>>, vector<128x128xbf16>
    %24 = arith.index_cast %21 : i32 to index
    %c0_11 = arith.constant 0 : index
    %25 = vector.load %arg16[%24, %c0_11] : memref<128x1xf32, #tpu.memory_space<vmem>>, vector<128x1xf32>
    %c0_12 = arith.constant 0 : index
    %c0_13 = arith.constant 0 : index
    %26 = vector.load %arg17[%c0_12, %c0_13] : memref<1x128xf32, #tpu.memory_space<vmem>>, vector<1x128xf32>
    %27 = vector.broadcast %25 : vector<128x1xf32> to vector<128x128xf32>
    %28 = vector.broadcast %26 : vector<1x128xf32> to vector<128x128xf32>
    %29 = arith.addf %27, %28 : vector<128x128xf32>
    %30 = math.tanh %29 : vector<128x128xf32>
    %31 = arith.truncf %30 : vector<128x128xf32> to vector<128x128xbf16>
    %32 = arith.mulf %31, %23 : vector<128x128xbf16>
    %c0_14 = arith.constant 0 : index
    %c0_15 = arith.constant 0 : index
    %33 = vector.load %arg14[%c0_14, %c0_15] : memref<128x128xbf16, #tpu.memory_space<vmem>>, vector<128x128xbf16>
    %cst = arith.constant dense<0.000000e+00> : vector<128x128xf32>
    %34 = tpu.matmul %32, %33, %cst {dimension_numbers = #tpu.dot_dimension_numbers<[1], [0], [0], [1], [0, 0, 1, 1], [], []>} : vector<128x128xbf16>, vector<128x128xbf16>, vector<128x128xf32> -> vector<128x128xf32>
    %c128_i32_16 = arith.constant 128 : i32
    %35 = arith.muli %11, %c128_i32_16 : i32
    %36 = arith.addi %35, %21 : i32
    %37 = tpu.assume_multiple %36, 128 : i32
    %38 = arith.index_cast %21 : i32 to index
    %c0_17 = arith.constant 0 : index
    %39 = vector.load %arg15[%38, %c0_17] : memref<128x128xf32, #tpu.memory_space<vmem>>, vector<128x128xf32>
    %40 = vector.broadcast %0 : f32 to vector<128x128xf32>
    %41 = arith.mulf %40, %39 : vector<128x128xf32>
    %42 = arith.addf %41, %34 : vector<128x128xf32>
    %43 = arith.index_cast %37 : i32 to index
    %c0_18 = arith.constant 0 : index
    %44 = vector.load %arg13[%43, %c0_18] : memref<256x128xf32, #tpu.memory_space<vmem>>, vector<128x128xf32>
    tpu.vector_store %arg13[%43, %c0_18], %42 {strides = array<i32>} : memref<256x128xf32, #tpu.memory_space<vmem>>, vector<128x128xf32>,
    %c1_i32_19 = arith.constant 1 : i32
    %45 = arith.cmpi eq, %arg0, %c1_i32_19 : i32
    %c0_i32_20 = arith.constant 0 : i32
    %46 = arith.cmpi eq, %arg1, %c0_i32_20 : i32
    %47 = arith.andi %45, %46 : i1
    %48 = arith.extui %47 : i1 to i32
    %c0_i32_21 = arith.constant 0 : i32
    %49 = arith.cmpi ne, %48, %c0_i32_21 : i32
    scf.if %49 {
      %c0_22 = arith.constant 0 : index
      %c0_23 = arith.constant 0 : index
      %50 = vector.load %arg13[%c0_22, %c0_23] : memref<256x128xf32, #tpu.memory_space<vmem>>, vector<128x128xf32>
      %c0_24 = arith.constant 0 : index
      %c0_25 = arith.constant 0 : index
      %51 = vector.load %arg8[%c0_24, %c0_25] : memref<128x128xf32, #tpu.memory_space<vmem>>, vector<128x128xf32>
      %cst_26 = arith.constant dense<0.000000e+00> : vector<128x128xf32>
      %52 = tpu.matmul %50, %51, %cst_26 {dimension_numbers = #tpu.dot_dimension_numbers<[1], [0], [0], [1], [0, 0, 1, 1], [], []>} : vector<128x128xf32>, vector<128x128xf32>, vector<128x128xf32> -> vector<128x128xf32>
      %c0_27 = arith.constant 0 : index
      %c0_28 = arith.constant 0 : index
      %53 = vector.load %arg9[%c0_27, %c0_28] : memref<1x128xf32, #tpu.memory_space<vmem>>, vector<1x128xf32>
      %54 = vector.broadcast %53 : vector<1x128xf32> to vector<128x128xf32>
      %55 = arith.addf %52, %54 : vector<128x128xf32>
      %c0_29 = arith.constant 0 : index
      %c0_30 = arith.constant 0 : index
      %56 = vector.load %arg12[%c0_29, %c0_30] : memref<128x128xf32, #tpu.memory_space<vmem>>, vector<128x128xf32>
      tpu.vector_store %arg12[%c0_29, %c0_30], %55 {strides = array<i32>} : memref<128x128xf32, #tpu.memory_space<vmem>>, vector<128x128xf32>,
      %c0_31 = arith.constant 0 : index
      %c0_32 = arith.constant 0 : index
      %57 = vector.load %arg10[%c0_31, %c0_32] : memref<8x128xf32, #tpu.memory_space<vmem>>, vector<8x128xf32>
      %cst_33 = arith.constant dense<0.000000e+00> : vector<8x128xf32>
      %58 = tpu.matmul %57, %55, %cst_33 {dimension_numbers = #tpu.dot_dimension_numbers<[1], [0], [0], [1], [0, 0, 1, 1], [], []>} : vector<8x128xf32>, vector<128x128xf32>, vector<8x128xf32> -> vector<8x128xf32>
      %c0_34 = arith.constant 0 : index
      %c0_35 = arith.constant 0 : index
      %59 = vector.load %arg11[%c0_34, %c0_35] : memref<8x128xf32, #tpu.memory_space<vmem>>, vector<8x128xf32>
      tpu.vector_store %arg11[%c0_34, %c0_35], %58 {strides = array<i32>} : memref<8x128xf32, #tpu.memory_space<vmem>>, vector<8x128xf32>,
    } else {
    }
    return
  }
  func.func @transform_0(%arg0: i32, %arg1: i32) -> (i32, i32) {
    %c0_i32 = arith.constant 0 : i32
    %c0_i32_0 = arith.constant 0 : i32
    %c0_i32_1 = arith.constant 0 : i32
    return %c0_i32, %c0_i32_0 : i32, i32
  }
  func.func @transform_1(%arg0: i32, %arg1: i32) -> (i32, i32) {
    %c0_i32 = arith.constant 0 : i32
    %c0_i32_0 = arith.constant 0 : i32
    %c0_i32_1 = arith.constant 0 : i32
    return %c0_i32, %c0_i32_0 : i32, i32
  }
  func.func @transform_2(%arg0: i32, %arg1: i32) -> (i32, i32) {
    %c0_i32 = arith.constant 0 : i32
    %c0_i32_0 = arith.constant 0 : i32
    %c0_i32_1 = arith.constant 0 : i32
    return %c0_i32, %c0_i32_0 : i32, i32
  }
  func.func @transform_3(%arg0: i32, %arg1: i32) -> (i32, i32) {
    %c0_i32 = arith.constant 0 : i32
    %c0_i32_0 = arith.constant 0 : i32
    %c0_i32_1 = arith.constant 0 : i32
    return %c0_i32, %c0_i32_0 : i32, i32
  }
  func.func @transform_4(%arg0: i32, %arg1: i32) -> (i32, i32) {
    %c0_i32 = arith.constant 0 : i32
    %c0_i32_0 = arith.constant 0 : i32
    return %arg0, %c0_i32 : i32, i32
  }
  func.func @transform_5(%arg0: i32, %arg1: i32) -> (i32, i32) {
    %c0_i32 = arith.constant 0 : i32
    %c0_i32_0 = arith.constant 0 : i32
    %c0_i32_1 = arith.constant 0 : i32
    return %c0_i32, %c0_i32_0 : i32, i32
  }
  func.func @transform_6(%arg0: i32, %arg1: i32) -> (i32, i32) {
    %c0_i32 = arith.constant 0 : i32
    %c0_i32_0 = arith.constant 0 : i32
    %c0_i32_1 = arith.constant 0 : i32
    return %c0_i32, %c0_i32_0 : i32, i32
  }
  func.func @transform_7(%arg0: i32, %arg1: i32) -> (i32, i32) {
    %c0_i32 = arith.constant 0 : i32
    %c0_i32_0 = arith.constant 0 : i32
    %c0_i32_1 = arith.constant 0 : i32
    return %c0_i32, %c0_i32_0 : i32, i32
  }
  func.func @transform_8(%arg0: i32, %arg1: i32) -> (i32, i32) {
    %c0_i32 = arith.constant 0 : i32
    %c0_i32_0 = arith.constant 0 : i32
    %c0_i32_1 = arith.constant 0 : i32
    return %c0_i32, %c0_i32_0 : i32, i32
  }
  func.func @transform_9(%arg0: i32, %arg1: i32) -> (i32, i32) {
    %c0_i32 = arith.constant 0 : i32
    %c0_i32_0 = arith.constant 0 : i32
    %c0_i32_1 = arith.constant 0 : i32
    return %c0_i32, %c0_i32_0 : i32, i32
  }
  func.func @transform_10(%arg0: i32, %arg1: i32) -> (i32, i32) {
    %c0_i32 = arith.constant 0 : i32
    %c0_i32_0 = arith.constant 0 : i32
    %c0_i32_1 = arith.constant 0 : i32
    return %c0_i32, %c0_i32_0 : i32, i32
  }
}

</mosaic_0001>

<bundles_post_ra>
// kernel: tpu_custom_call.1
= control target key start
LH: loop header
LB: loop body
LE: loop exit
PB: predicated region body
PF: predicated region fallthrough
CT: control target
= control target key end

     0   :  { %s3224_s0 = inlined_call_operand.<no memory space> [shape: f32[1,1], index: 0, kind: input, shape index: {}]   ;;  %s3225_s1 = inlined_call_operand.hbm [shape: f32[128,128], index: 1, kind: input, shape index: {}]   ;;  %s3226_s2 = inlined_call_operand.hbm [shape: f32[128,128], index: 2, kind: input, shape index: {}]   ;;  %s3227_s3 = inlined_call_operand.vmem [shape: f32[1,128], index: 3, kind: input, shape index: {}]   ;;  %s3228_s4 = inlined_call_operand.hbm [shape: f32[16,128], index: 4, kind: input, shape index: {}]   ;;  %s3229_s5 = inlined_call_operand.hbm [shape: bf16[128,128], index: 5, kind: input, shape index: {}]   ;;  %s3230_s6 = inlined_call_operand.hbm [shape: f32[128,128], index: 6, kind: input, shape index: {}]   ;;  %s3231_s7 = inlined_call_operand.vmem [shape: f32[1,128], index: 7, kind: input, shape index: {}]   ;;  %s3232_s8 = inlined_call_operand.vmem [shape: f32[8,128], index: 8, kind: input, shape index: {}]   ;;  %s3233_s9 = inlined_call_operand.hbm [shape: f32[8,128], index: 9, kind: output, shape index: {0}]   ;;  %s3234_s10 = inlined_call_operand.hbm [shape: f32[128,128], index: 10, kind: output, shape index: {1}]  }
   0x1   :  { %3241 = sst [smem:[#allocation27_spill]] %s3232_s8 }
   0x2   :  { %3242 = sst [smem:[#allocation28_spill]] %s3233_s9 }
   0x3   :  { %3243 = sst [smem:[#allocation29_spill]] %s3234_s10 }
   0x4   :  { %16 = sst [smem:[#allocation7]] %s3224_s0 }
   0x5   :  { %17 = vsyncpa [#allocation9], 0 }
   0x6   :  { %18 = vsyncpa [#allocation12], 0 }
   0x7   :  { %19 = vsyncpa [#allocation16], 0 }
   0x8   :  { %20 = vsyncpa [#allocation10], 0 }
   0x9   :  { %21 = vsyncpa [#allocation19], 0  ;;  %s2738_s15 = smov 0   ;;  %s2740_s16 = smov 0  }
   0xa   :  { %s2742_s17 = smov 0   ;;  %s2744_s18 = smov 0  }
   0xb   :  { %s2746_s19 = smov 0   ;;  %s2748_s20 = smov 0  }
   0xc LB: > { %s2769_s0 = sadd.s32 4294967295, %s2657_s20   ;;  %p1727_p0 = scmp.ge.s32.totalorder %s2657_s20, 1  ;;  %s2657_s20 = sphi %s2748_s20, %s27_s20   ;;  %s2653_s19 = sphi %s2746_s19, %s3269_s19   ;;  %s2649_s18 = sphi %s2744_s18, %s3268_s18   ;;  %s2645_s17 = sphi %s2742_s17, %s3267_s17   ;;  %s2641_s16 = sphi %s2740_s16, %s3266_s16   ;;  %s2637_s15 = sphi %s2738_s15, %s3265_s15  }
   0xd   : > { %p3237_p1 = scmp.eq.s32.totalorder %s2769_s0, 0  ;;  %p280_p2 = scmp.lt.s32.totalorder %s2657_s20, 3 }
   0xe   : > { %s2659_s22 = smov [#allocation8]   ;;  %s2660_s25 = smov [#allocation11]  }
   0xf   : > { %p2774_p3 = pnand %p1727_p0, %p280_p2  ;;  %s295_s23 = sshll.u32 %s2659_s22, 4  ;;  %s2778_s23 = int_to_ptr.vmem [resolvable:$true] %s295_s23 }
  0x10   : > { %s308_s26 = sshll.u32 %s2660_s25, 4  ;;  %s2661_s27 = smov [#allocation14]   ;;  %s2788_s26 = int_to_ptr.vmem [resolvable:$true] %s308_s26 }
  0x11   : > { %s3244_s21 = scalar_select %p2774_p3, 1, 0 }
  0x12   : > { %p2249_p4 = pneg %p2774_p3  ;;  %s2790_s28 = sshll.u32 %s2661_s27, 4  ;;  %s325_s28 = int_to_ptr.vmem [resolvable:$true] %s2790_s28 }
  0x13   : > { %s2389_s11 = scalar_lea.hbm %s3225_s1, 2048 }
  0x14   : > { %p2784_p5 = pnand %p2249_p4, %p3237_p1  ;;  %p2390_p6 = scmp.ne.s32.totalorder %s3225_s1, %s2389_s11 }
  0x15   : > { %p2396_p10 = scmp.lt.u32.totalorder %s2389_s11, %s3225_s1 }
  0x16   : > { %p2800_p7 = pneg %p2784_p5 }
  0x18   : > { %p2392_p8 = pnand %p2800_p7, %p2390_p6 }
  0x1a   : > { %p2393_p9 = pneg %p2392_p8 }
  0x1c   : > { %p2398_p11 = pnand %p2396_p10, %p2393_p9 }
  0x1e   : > { %2401 = shalt.err (!%p2398_p11)
}
  0x1f   : > { %s2402_s27 = scalar_lea.vmem %s2778_s23, 2048  ;;  %p2410_p2 = scmp.lt.s32.totalorder %s2778_s23, %s2778_s23 }
  0x20   : > { %p2403_p12 = scmp.ne.s32.totalorder %s2778_s23, %s2402_s27  ;;  %p2411_p4 = scmp.lt.s32.totalorder %s2402_s27, %s2402_s27 }
  0x22   : > { %p2405_p13 = pnand %p2403_p12, %p2800_p7  ;;  %p2412_p6 = por %p2411_p4, %p2410_p2 }
  0x24   : > { %p2406_p0 = pneg %p2405_p13 }
  0x26   : > { %p2413_p8 = pnand %p2412_p6, %p2406_p0 }
  0x28   : > { %2416 = shalt.err (!%p2413_p8)
}
  0x29   : > { %s3239_s29 = smov 128   ;;  %s3240_s30 = smov 8  }
  0x2a   : > { %2252 = dma.hbm_to_vmem [thread:$0]  (!%p2784_p5), %s3225_s1, 2048, %s2778_s23, [#allocation9], %s3239_s29, %s3239_s29, %s3240_s30  }
  0x2b   : > { %s2417_s25 = scalar_lea.hbm %s3226_s2, 2048 }
  0x2c   : > { %p2418_p9 = scmp.ne.s32.totalorder %s3226_s2, %s2417_s25  ;;  %p2424_p12 = scmp.lt.u32.totalorder %s2417_s25, %s3226_s2 }
  0x2e   : > { %p2420_p10 = pnand %p2418_p9, %p2800_p7 }
  0x30   : > { %p2421_p11 = pneg %p2420_p10 }
  0x32   : > { %p2426_p13 = pnand %p2424_p12, %p2421_p11 }
  0x34   : > { %2429 = shalt.err (!%p2426_p13)
}
  0x35   : > { %s2430_s23 = scalar_lea.vmem %s2788_s26, 2048  ;;  %p2438_p6 = scmp.lt.s32.totalorder %s2788_s26, %s2788_s26 }
  0x36   : > { %p2431_p0 = scmp.ne.s32.totalorder %s2788_s26, %s2430_s23  ;;  %p2439_p8 = scmp.lt.s32.totalorder %s2430_s23, %s2430_s23 }
  0x38   : > { %p2433_p2 = pnand %p2431_p0, %p2800_p7  ;;  %p2440_p9 = por %p2439_p8, %p2438_p6 }
  0x3a   : > { %p2434_p4 = pneg %p2433_p2 }
  0x3c   : > { %p2441_p10 = pnand %p2440_p9, %p2434_p4 }
  0x3e   : > { %2444 = shalt.err (!%p2441_p10)
}
  0x3f   : > { %2255 = dma.hbm_to_vmem [thread:$0]  (!%p2784_p5), %s3226_s2, 2048, %s2788_s26, [#allocation12], %s3239_s29, %s3239_s29, %s3240_s30  }
  0x40   : > { %s2445_s12 = scalar_lea.hbm %s3229_s5, 1024 }
  0x41   : > { %p2446_p11 = scmp.ne.s32.totalorder %s3229_s5, %s2445_s12  ;;  %p2452_p0 = scmp.lt.u32.totalorder %s2445_s12, %s3229_s5 }
  0x43   : > { %p2448_p12 = pnand %p2446_p11, %p2800_p7 }
  0x45   : > { %p2449_p13 = pneg %p2448_p12 }
  0x47   : > { %p2454_p2 = pnand %p2452_p0, %p2449_p13 }
  0x49   : > { %2457 = shalt.err (!%p2454_p2)
}
  0x4a   : > { %s2458_s23 = scalar_lea.vmem %s325_s28, 1024  ;;  %p2466_p9 = scmp.lt.s32.totalorder %s325_s28, %s325_s28 }
  0x4b   : > { %p2459_p4 = scmp.ne.s32.totalorder %s325_s28, %s2458_s23  ;;  %p2467_p10 = scmp.lt.s32.totalorder %s2458_s23, %s2458_s23 }
  0x4d   : > { %p2461_p6 = pnand %p2459_p4, %p2800_p7  ;;  %p2468_p1 = por %p2467_p10, %p2466_p9 }
  0x4f   : > { %p2462_p8 = pneg %p2461_p6 }
  0x51   : > { %p2469_p3 = pnand %p2468_p1, %p2462_p8 }
  0x53   : > { %2472 = shalt.err (!%p2469_p3)
}
  0x54   : > { %s2664_s26 = smov 64   ;;  %s2665_s8 = smov 4  }
  0x55   : > { %2258 = dma.hbm_to_vmem [thread:$0]  (!%p2784_p5), %s3229_s5, 1024, %s325_s28, [#allocation12], %s2664_s26, %s2664_s26, %s2665_s8  }
  0x56   : > { %s2666_s11 = smov [#allocation15]   ;;  %s2473_s25 = scalar_lea.hbm %s3230_s6, 2048 }
  0x57   : > { %s337_s12 = sshll.u32 %s2666_s11, 4  ;;  %p2474_p1 = scmp.ne.s32.totalorder %s3230_s6, %s2473_s25  ;;  %s338_s12 = int_to_ptr.vmem [resolvable:$true] %s337_s12 }
  0x58   : > { %p2480_p12 = scmp.lt.u32.totalorder %s2473_s25, %s3230_s6 }
  0x59   : > { %p2476_p3 = pnand %p2474_p1, %p2800_p7 }
  0x5b   : > { %p2477_p11 = pneg %p2476_p3 }
  0x5d   : > { %p2482_p13 = pnand %p2480_p12, %p2477_p11 }
  0x5f   : > { %2485 = shalt.err (!%p2482_p13)
}
  0x60   : > { %s2486_s28 = scalar_lea.vmem %s338_s12, 2048  ;;  %p2494_p6 = scmp.lt.s32.totalorder %s338_s12, %s338_s12 }
  0x61   : > { %p2487_p0 = scmp.ne.s32.totalorder %s338_s12, %s2486_s28  ;;  %p2495_p8 = scmp.lt.s32.totalorder %s2486_s28, %s2486_s28 }
  0x63   : > { %p2489_p2 = pnand %p2487_p0, %p2800_p7  ;;  %p2496_p9 = por %p2495_p8, %p2494_p6 }
  0x65   : > { %p2490_p4 = pneg %p2489_p2 }
  0x67   : > { %p2497_p10 = pnand %p2496_p9, %p2490_p4 }
  0x69   : > { %2500 = shalt.err (!%p2497_p10)
}
  0x6a   : > { %s3247_s26 = smov 8   ;;  %s3248_s8 = smov 128  }
  0x6b   : > { %2261 = dma.hbm_to_vmem [thread:$0]  (!%p2784_p5), %s3230_s6, 2048, %s338_s12, [#allocation16], %s3248_s8, %s3248_s8, %s3247_s26  }
  0x6c   : > { %s39_s24 = sadd.s32 1, %s2653_s19  ;;  %s130_s14 = sadd.s32 1, %s2645_s17 }
  0x6d   : > { %p41_p7 = scmp.ge.s32.totalorder %s39_s24, 2  ;;  %p137_p1 = scmp.ne.s32.totalorder %s2645_s17, %s2641_s16 }
  0x6e   : > { %p138_p3 = scmp.eq.s32.totalorder %s2657_s20, 0  ;;  %p143_p11 = scmp.ne.s32.totalorder %s2641_s16, %s2637_s15 }
  0x6f   : > { %s3271_s24 = smov (%p41_p7, %s39_s24), 0  ;;  %p3250_p13 = scmp.eq.s32.totalorder %s2769_s0, 0 }
  0x70   : > { %p2899_p12 = por %p138_p3, %p137_p1  ;;  %s127_s11 = ssub.s32 %s2653_s19, %s3271_s24 }
  0x71   : > { %p2905_p0 = por %p3250_p13, %p143_p11  ;;  %p2270_p5 = scmp.lt.s32.totalorder %s2657_s20, 2 }
  0x72   : > { %p128_p2 = scmp.eq.s32.totalorder %s127_s11, 0  ;;  %s357_s12 = sand.u32 1, %s2657_s20  }
  0x73   : > { %s359_s13 = sand.u32 1, %s2645_s17   ;;  %s1734_s25 = sshll.u32 %s2653_s19, 7 }
  0x74   : > { %s2915_s22 = scalar_select %p128_p2, %s2645_s17, %s130_s14  }
  0x75   : > { %s1733_s15 = sshll.u32 %s359_s13, 3  ;;  %s2921_s28 = scalar_lea.hbm %s3228_s4, %s1734_s25 }
  0x76   : > { %s361_s26 = scalar_lea.vmem [#allocation13], %s1733_s15  ;;  %p2925_p4 = pnand %p2270_p5, %p2899_p12 }
  0x77   : > { %s368_s8 = sshll.u32 %s361_s26, 4  ;;  %s358_s30 = scalar_lea.sflag [#allocation9], %s357_s12  ;;  %s2929_s8 = int_to_ptr.vmem [resolvable:$true] %s368_s8 }
  0x78   : > { %s2501_s14 = scalar_lea.hbm %s2921_s28, 128  ;;  %p2503_p8 = pneg %p2925_p4 }
  0x79   : > { %p2502_p6 = scmp.ne.s32.totalorder %s2921_s28, %s2501_s14  ;;  %s2506_s9 = scalar_lea.hbm %s3228_s4, 256 }
  0x7a   : > { %p2507_p7 = scmp.lt.u32.totalorder %s2921_s28, %s3228_s4  ;;  %p2508_p1 = scmp.lt.u32.totalorder %s2506_s9, %s2501_s14 }
  0x7b   : > { %p2504_p9 = pnand %p2503_p8, %p2502_p6  ;;  %p2510_p11 = scmp.lt.u32.totalorder %s2501_s14, %s2921_s28 }
  0x7c   : > { %p2509_p3 = por %p2508_p1, %p2507_p7 }
  0x7d   : > { %p2505_p10 = pneg %p2504_p9 }
  0x7e   : > { %p2511_p12 = por %p2510_p11, %p2509_p3 }
  0x80   : > { %p2512_p13 = pnand %p2511_p12, %p2505_p10 }
  0x82   : > { %2515 = shalt.err (!%p2512_p13)
}
  0x83   : > { %s2516_s12 = scalar_lea.vmem %s2929_s8, 128  ;;  %s2667_s27 = smov [#allocation13]  }
  0x84   : > { %p2517_p5 = scmp.ne.s32.totalorder %s2929_s8, %s2516_s12  ;;  %s2521_s23 = sshll.u32 %s2667_s27, 4  ;;  %s2522_s23 = int_to_ptr.vmem [resolvable:$false] %s2521_s23 }
  0x85   : > { %s2523_s26 = scalar_lea.vmem %s2522_s23, 256  ;;  %p2524_p9 = scmp.lt.s32.totalorder %s2929_s8, %s2522_s23 }
  0x86   : > { %p2519_p2 = pnand %p2517_p5, %p2503_p8  ;;  %p2525_p7 = scmp.lt.s32.totalorder %s2523_s26, %s2516_s12 }
  0x88   : > { %p2520_p6 = pneg %p2519_p2  ;;  %p2526_p1 = por %p2525_p7, %p2524_p9 }
  0x8a   : > { %p2527_p3 = pnand %p2526_p1, %p2520_p6 }
  0x8c   : > { %2530 = shalt.err (!%p2527_p3)
}
  0x8d   : > { %2265 = dma.hbm_to_vmem [thread:$0]  (!%p2925_p4), %s2921_s28, 128, %s2929_s8, %s358_s30  }
  0x8e   : > { %p3253_p10 = scmp.ne.s32.totalorder %s3244_s21, 0 }
  0x8f   : > { %p3254_p8 = scmp.eq.s32.totalorder (!%p3253_p10), %s2769_s0, 0 }
  0x90   : > { %377 = sbr.rel (%p3253_p10) target bundleno = 1526 (0x5f6), region = 56 }
  0x97   : > { %2608 = dma.done.wait (%p3254_p8), [#allocation9], 2048   ;;  %p3255_p11 = pmov %p3254_p8 }
  0x98   : > { %p3256_p12 = pmov %p3254_p8 }
  0x99   : > { %2610 = vsyncadd (%p3255_p11), [#allocation9], 4294965248 }
  0x9a   : > { %2612 = dma.done.wait (%p3256_p12), [#allocation12], 2048   ;;  %p3257_p13 = pmov %p3254_p8 }
  0x9b   : > { %s387_s29 = sand.u32 1, %s2769_s0   ;;  %s389_s28 = sand.u32 1, %s2641_s16  }
  0x9c   : > { %2614 = vsyncadd (%p3257_p13), [#allocation12], 4294965248  ;;  %s2968_s8 = sshll.u32 %s389_s28, 3  ;;  %s388_s21 = scalar_lea.sflag [#allocation9], %s387_s29 }
  0x9d   : > { %s391_s30 = scalar_lea.vmem [#allocation13], %s2968_s8 }
  0x9e   : > { %2616 = dma.done.wait (%p2905_p0), %s388_s21, 128  }
  0x9f   : > { %2618 = vsyncadd (%p2905_p0), %s388_s21, 4294967168  ;;  %p3258_p4 = pmov %p3254_p8 }
  0xa1   : > { %2620 = dma.done.wait (%p3258_p4), [#allocation12], 1024   ;;  %p3259_p5 = pmov %p3258_p4 }
  0xa2   : > { %p3260_p2 = pmov %p3258_p4 }
  0xa3   : > { %2622 = vsyncadd (%p3259_p5), [#allocation12], 4294966272 }
  0xa4   : > { %2624 = dma.done.wait (%p3260_p2), [#allocation16], 2048   ;;  %p3261_p6 = pmov %p3260_p2 }
  0xa5   : > { %p433_p9 = scmp.lt.s32.totalorder %s2649_s18, 0  ;;  %s434_s14 = ssub.s32 0, %s2649_s18 }
  0xa6   : > { %2626 = vsyncadd (%p3261_p6), [#allocation16], 4294965248  ;;  %s2985_s10 = sld [smem:[#allocation7]]  ;;  %s1741_s11 = smin.u32 %s2649_s18, %s434_s14 }
  0xa7   : > { %s436_s13 = sand.u32 1, %s1741_s11   ;;  %p446_p0 = scmp.eq.s32.totalorder %s2649_s18, 0 }
  0xa8   : > { %s437_s9 = ssub.s32 0, %s436_s13  ;;  %v468_v0 = vld [vmem:[#allocation11] sm:$0xff] (%p446_p0)  ;;  %v469_v1 = vld [vmem:[#allocation11 + $0x8] sm:$0xff] (%p446_p0)  ;;  %v470_v2 = vld [vmem:[#allocation11 + $0x10] sm:$0xff] (%p446_p0)  ;;  %v2668_v40 = vmov (%p446_p0), 0.0  }
  0xa9   : > { %s3273_s9 = smov (!%p433_p9, %s437_s9), %s436_s13  ;;  %451 = sbr.rel (!%p446_p0) target bundleno = 429 (0x1ad), region = 80 }
  0xaa   : > { %p1743_p7 = scmp.lt.s32.totalorder %s3273_s9, 0  ;;  %s443_s15 = sadd.s32 2, %s3273_s9  ;;  %v2095_v3 = vpack.c.bf16 (%p446_p0), %v469_v1, %v468_v0  ;;  %v471_v4 = vld [vmem:[#allocation11 + $0x18] sm:$0xff] (%p446_p0)  ;;  %v472_v6 = vld [vmem:[#allocation11 + $0x20] sm:$0xff] (%p446_p0)  ;;  %v473_v7 = vld [vmem:[#allocation11 + $0x28] sm:$0xff] (%p446_p0)  ;;  %703 = vst [vmem:[#allocation4 + $0x10] sm:$0xff] (%p446_p0), %v2668_v40 }
  0xab   : > { %v2099_v5 = vpack.c.bf16 (%p446_p0), %v471_v4, %v470_v2  ;;  %v2103_v8 = vpack.c.bf16 (%p446_p0), %v473_v7, %v472_v6  ;;  %v452_v9 = vld [vmem:[#allocation8] sm:$0xff] (%p446_p0)  ;;  %v474_v11 = vld [vmem:[#allocation11 + $0x30] sm:$0xff] (%p446_p0)  ;;  %v475_v12 = vld [vmem:[#allocation11 + $0x38] sm:$0xff] (%p446_p0)  ;;  %704 = vst [vmem:[#allocation4 + $0x18] sm:$0xff] (%p446_p0), %v2668_v40 }
  0xac   : > { %s3275_s15 = smov (!%p1743_p7, %s443_s15), %s3273_s9  ;;  %2096 = vmatprep.subr.bf16.mxu0 (%p446_p0), %v2095_v3  ;;  %2207 = vmatprep.subr.bf16.mxu1 (%p446_p0), %v2095_v3  ;;  %v460_v10 = vld [vmem:[#allocation8 + $0x40] sm:$0xff] (%p446_p0)  ;;  %v2107_v13 = vpack.c.bf16 (%p446_p0), %v475_v12, %v474_v11  ;;  %v477_v15 = vld [vmem:[#allocation11 + $0x48] sm:$0xff] (%p446_p0)  ;;  %v478_v17 = vld [vmem:[#allocation11 + $0x50] sm:$0xff] (%p446_p0)  ;;  %705 = vst [vmem:[#allocation4 + $0x20] sm:$0xff] (%p446_p0), %v2668_v40 }
  0xad   : > { %s445_s25 = ssub.s32 1, %s3275_s15  ;;  %2098 = vmatpush3.bf16.msra.mxu0 (%p446_p0), %v2095_v3  ;;  %2215 = vmatpush3.bf16.msra.mxu1 (%p446_p0), %v2095_v3  ;;  %v476_v14 = vld [vmem:[#allocation11 + $0x40] sm:$0xff] (%p446_p0)  ;;  %v479_v18 = vld [vmem:[#allocation11 + $0x58] sm:$0xff] (%p446_p0)  ;;  %v481_v21 = vld [vmem:[#allocation11 + $0x68] sm:$0xff] (%p446_p0)  ;;  %706 = vst [vmem:[#allocation4 + $0x28] sm:$0xff] (%p446_p0), %v2668_v40 }
  0xae   : > { %2100 = vmatprep.subr.bf16.mxu0 (%p446_p0), %v2099_v5  ;;  %2208 = vmatprep.subr.bf16.mxu1 (%p446_p0), %v2099_v5  ;;  %v2111_v16 = vpack.c.bf16 (%p446_p0), %v477_v15, %v476_v14  ;;  %v2115_v19 = vpack.c.bf16 (%p446_p0), %v479_v18, %v478_v17  ;;  %v480_v20 = vld [vmem:[#allocation11 + $0x60] sm:$0xff] (%p446_p0)  ;;  %v482_v23 = vld [vmem:[#allocation11 + $0x70] sm:$0xff] (%p446_p0)  ;;  %v483_v24 = vld [vmem:[#allocation11 + $0x78] sm:$0xff] (%p446_p0)  ;;  %707 = vst [vmem:[#allocation4 + $0x30] sm:$0xff] (%p446_p0), %v2668_v40 }
  0xaf   : > { %1913 = vmatprep.mubr.f32.mxu0 (%p446_p0), %v452_v9  ;;  %1925 = vmatprep.mubr.f32.mxu1 (%p446_p0), %v460_v10  ;;  %v2119_v22 = vpack.c.bf16 (%p446_p0), %v481_v21, %v480_v20  ;;  %v2123_v25 = vpack.c.bf16 (%p446_p0), %v483_v24, %v482_v23  ;;  %v453_v26 = vld [vmem:[#allocation8 + $0x8] sm:$0xff] (%p446_p0)  ;;  %v454_v28 = vld [vmem:[#allocation8 + $0x10] sm:$0xff] (%p446_p0)  ;;  %v455_v30 = vld [vmem:[#allocation8 + $0x18] sm:$0xff] (%p446_p0)  ;;  %708 = vst [vmem:[#allocation4 + $0x38] sm:$0xff] (%p446_p0), %v2668_v40 }
  0xb0   : > { %v461_v27 = vld [vmem:[#allocation8 + $0x48] sm:$0xff]  ;;  %v462_v29 = vld [vmem:[#allocation8 + $0x50] sm:$0xff]  ;;  %v463_v31 = vld [vmem:[#allocation8 + $0x58] sm:$0xff]  ;;  %709 = vst [vmem:[#allocation4 + $0x40] sm:$0xff] %v2668_v40 }
  0xb1   : > { %2102 = vmatpush3.bf16.msra.mxu0 %v2099_v5  ;;  %2216 = vmatpush3.bf16.msra.mxu1 %v2099_v5  ;;  %v456_v32 = vld [vmem:[#allocation8 + $0x20] sm:$0xff]  ;;  %v457_v34 = vld [vmem:[#allocation8 + $0x28] sm:$0xff]  ;;  %v458_v36 = vld [vmem:[#allocation8 + $0x30] sm:$0xff]  ;;  %710 = vst [vmem:[#allocation4 + $0x48] sm:$0xff] %v2668_v40 }
  0xb2   : > { %2104 = vmatprep.subr.bf16.mxu0 %v2103_v8  ;;  %2209 = vmatprep.subr.bf16.mxu1 %v2103_v8  ;;  %v464_v33 = vld [vmem:[#allocation8 + $0x60] sm:$0xff]  ;;  %v465_v35 = vld [vmem:[#allocation8 + $0x68] sm:$0xff]  ;;  %v466_v37 = vld [vmem:[#allocation8 + $0x70] sm:$0xff]  ;;  %711 = vst [vmem:[#allocation4 + $0x50] sm:$0xff] %v2668_v40 }
  0xb3   : > { %v459_v38 = vld [vmem:[#allocation8 + $0x38] sm:$0xff]  ;;  %712 = vst [vmem:[#allocation4 + $0x58] sm:$0xff] %v2668_v40  ;;  %713 = vst [vmem:[#allocation4 + $0x60] sm:$0xff] %v2668_v40 }
  0xb4   : > { %v467_v39 = vld [vmem:[#allocation8 + $0x78] sm:$0xff]  ;;  %714 = vst [vmem:[#allocation4 + $0x68] sm:$0xff] %v2668_v40  ;;  %715 = vst [vmem:[#allocation4 + $0x70] sm:$0xff] %v2668_v40 }
  0xb5   : > { %2106 = vmatpush3.bf16.msra.mxu0 %v2103_v8  ;;  %2217 = vmatpush3.bf16.msra.mxu1 %v2103_v8  ;;  %716 = vst [vmem:[#allocation4 + $0x78] sm:$0xff] %v2668_v40  ;;  %719 = vst [vmem:[#allocation2 + $0x10] sm:$0xff] %v2668_v40  ;;  %v1745_v41 = vld [vmem:[%s3227_s3] ss:$0 sm:$0xff] }
  0xb6   : > { %2108 = vmatprep.subr.bf16.mxu0 %v2107_v13  ;;  %2210 = vmatprep.subr.bf16.mxu1 %v2107_v13  ;;  %720 = vst [vmem:[#allocation2 + $0x18] sm:$0xff] %v2668_v40  ;;  %721 = vst [vmem:[#allocation2 + $0x20] sm:$0xff] %v2668_v40 }
  0xb7   : > { %722 = vst [vmem:[#allocation2 + $0x28] sm:$0xff] %v2668_v40  ;;  %723 = vst [vmem:[#allocation2 + $0x30] sm:$0xff] %v2668_v40 }
  0xb8   : > { %724 = vst [vmem:[#allocation2 + $0x38] sm:$0xff] %v2668_v40  ;;  %725 = vst [vmem:[#allocation2 + $0x40] sm:$0xff] %v2668_v40 }
  0xb9   : > { %2110 = vmatpush3.bf16.msra.mxu0 %v2107_v13  ;;  %2218 = vmatpush3.bf16.msra.mxu1 %v2107_v13  ;;  %726 = vst [vmem:[#allocation2 + $0x48] sm:$0xff] %v2668_v40  ;;  %727 = vst [vmem:[#allocation2 + $0x50] sm:$0xff] %v2668_v40 }
  0xba   : > { %2112 = vmatprep.subr.bf16.mxu0 %v2111_v16  ;;  %2211 = vmatprep.subr.bf16.mxu1 %v2111_v16  ;;  %728 = vst [vmem:[#allocation2 + $0x58] sm:$0xff] %v2668_v40  ;;  %729 = vst [vmem:[#allocation2 + $0x60] sm:$0xff] %v2668_v40 }
  0xbb   : > { %730 = vst [vmem:[#allocation2 + $0x68] sm:$0xff] %v2668_v40  ;;  %731 = vst [vmem:[#allocation2 + $0x70] sm:$0xff] %v2668_v40 }
  0xbc   : > { %732 = vst [vmem:[#allocation2 + $0x78] sm:$0xff] %v2668_v40 }
  0xbd   : > { %2114 = vmatpush3.bf16.msra.mxu0 %v2111_v16  ;;  %2219 = vmatpush3.bf16.msra.mxu1 %v2111_v16 }
  0xbe   : > { %2116 = vmatprep.subr.bf16.mxu0 %v2115_v19  ;;  %2212 = vmatprep.subr.bf16.mxu1 %v2115_v19 }
  0xc1   : > { %2118 = vmatpush3.bf16.msra.mxu0 %v2115_v19  ;;  %2220 = vmatpush3.bf16.msra.mxu1 %v2115_v19 }
  0xc2   : > { %2120 = vmatprep.subr.bf16.mxu0 %v2119_v22  ;;  %2213 = vmatprep.subr.bf16.mxu1 %v2119_v22 }
  0xc5   : > { %2122 = vmatpush3.bf16.msra.mxu0 %v2119_v22  ;;  %2221 = vmatpush3.bf16.msra.mxu1 %v2119_v22 }
  0xc6   : > { %2124 = vmatprep.subr.bf16.mxu0 %v2123_v25  ;;  %2214 = vmatprep.subr.bf16.mxu1 %v2123_v25 }
  0xc9   : > { %2126 = vmatpush3.bf16.msra.mxu0 %v2123_v25  ;;  %2222 = vmatpush3.bf16.msra.mxu1 %v2123_v25 }
  0xcc   : > { %1914 = vmatmul.mubr.f32.vlgmr.msra.gmra.mrb[0].mxu0 %v453_v26  ;;  %1926 = vmatmul.mubr.f32.vlgmr.msra.gmra.mrb[0].mxu1 %v461_v27 }
  0xcd   : > { %1916 = vmatprep.mubr.f32.mxu0 %v454_v28  ;;  %1928 = vmatprep.mubr.f32.mxu1 %v462_v29 }
  0xd0   : > { %1917 = vmatmul.mubr.f32.gmra.mrb[2].mxu0 %v455_v30  ;;  %1929 = vmatmul.mubr.f32.gmra.mrb[2].mxu1 %v463_v31 }
  0xd1   : > { %1919 = vmatprep.mubr.f32.mxu0 %v456_v32  ;;  %1931 = vmatprep.mubr.f32.mxu1 %v464_v33 }
  0xd4   : > { %1920 = vmatmul.mubr.f32.gmra.mrb[4].mxu0 %v457_v34  ;;  %1932 = vmatmul.mubr.f32.gmra.mrb[4].mxu1 %v465_v35 }
  0xd5   : > { %1922 = vmatprep.mubr.f32.mxu0 %v458_v36  ;;  %1934 = vmatprep.mubr.f32.mxu1 %v466_v37 }
  0xd8   : > { %1923 = vmatmul.mubr.f32.gmra.mrb[6].mxu0 %v459_v38  ;;  %1935 = vmatmul.mubr.f32.gmra.mrb[6].mxu1 %v467_v39 }
 0x19f   : > { %v1915_v42 = vpop.f32.mrb[0].mxu0  ;;  %v1927_v43 = vpop.f32.mrb[0].mxu1 }
 0x1a0   : > { %v563_v44 = vadd.f32 %v1915_v42, %v1745_v41  ;;  %v557_v45 = vpop.f32.mrb[1].mxu0  ;;  %v597_v46 = vpop.f32.mrb[1].mxu1 }
 0x1a1   : > { %v558_v47 = vadd.f32 %v1745_v41, %v557_v45 }
 0x1a2   : > { %v637_v48 = vmax.f32 %v563_v44, 0.0 }
 0x1a3   : > { %v636_v49 = vmax.f32 %v558_v47, 0.0  ;;  %v1918_v50 = vpop.f32.mrb[2].mxu0  ;;  %v1930_v51 = vpop.f32.mrb[2].mxu1 }
 0x1a4   : > { %702 = vst [vmem:[#allocation4 + $0x8] sm:$0xff] %v637_v48  ;;  %718 = vst [vmem:[#allocation2 + $0x8] sm:$0xff] %v637_v48  ;;  %v567_v52 = vpop.f32.mrb[3].mxu0  ;;  %v607_v53 = vpop.f32.mrb[3].mxu1 }
 0x1a5   : > { %701 = vst [vmem:[#allocation4] sm:$0xff] %v636_v49  ;;  %717 = vst [vmem:[#allocation2] sm:$0xff] %v636_v49 }
 0x1a7   : > { %v1921_v54 = vpop.f32.mrb[4].mxu0  ;;  %v1933_v55 = vpop.f32.mrb[4].mxu1 }
 0x1a8   : > { %v577_v56 = vpop.f32.mrb[5].mxu0  ;;  %v617_v57 = vpop.f32.mrb[5].mxu1 }
 0x1ab   : > { %v1924_v58 = vpop.f32.mrb[6].mxu0  ;;  %v1936_v59 = vpop.f32.mrb[6].mxu1 }
 0x1ac   : > { %v587_v60 = vpop.f32.mrb[7].mxu0  ;;  %v627_v61 = vpop.f32.mrb[7].mxu1 }
 0x1ad PF: > { %s1746_s23 = sshll.u32 %s3275_s15, 7  ;;  %v771_v62 = vlaneseq  ;;  %v2669_v63 = vmov 0.0|0.0   ;;  %vm2670_vm0 = vmmov 0   ;;  %v2671_v0 = vmov 0.0   ;;  %v3003_v5 = vld [vmem:[%s391_s30] sm:$0xff]  ;;  %p1309_p1 = scmp.eq.s32.totalorder %s2649_s18, 1 }
 0x1ae   : > { %2127 = vmatprep.subr.bf16.mxu0 %v2669_v63  ;;  %1969 = vmatprep.mubr.msk.f32.mxu0 %vm2670_vm0, %v2671_v0  ;;  %s2997_s26 = scalar_lea.vmem [#allocation2], %s1746_s23  ;;  %v2672_v38 = vmov 0   ;;  %v841_v46 = vrot.slane %v3003_v5, 1  ;;  %vm823_vm1 = vcmask 7168   ;;  %s1756_s29 = sshll.u32 %s445_s25, 7  ;;  %vm2674_vm2 = vmmov (%p1309_p1), 0  }
 0x1af   : > { %v738_v1 = vld [vmem:[%s2997_s26] sm:$0xff]  ;;  %v739_v2 = vld [vmem:[%s2997_s26 + $0x8] sm:$0xff]  ;;  %v772_v3 = vshrl.u32 %v771_v62, 7  ;;  %v741_v6 = vld [vmem:[%s2997_s26 + $0x18] sm:$0xff]  ;;  %2347 = vset.pattern.permute.xlu0 %v2672_v38  ;;  %2348 = vset.pattern.permute.xlu1 %v2672_v38  ;;  %s3090_s28 = scalar_lea.vmem [#allocation2], %s1756_s29  ;;  %s3262_s14 = sld [smem:[#allocation27_spill]] (%p1309_p1) }
 0x1b0   : > { %v754_v4 = vpack.c.bf16 %v739_v2, %v738_v1  ;;  %v740_v7 = vld [vmem:[%s2997_s26 + $0x10] sm:$0xff]  ;;  %v743_v11 = vld [vmem:[%s2997_s26 + $0x28] sm:$0xff]  ;;  %v742_v12 = vld [vmem:[%s2997_s26 + $0x20] sm:$0xff] }
 0x1b1   : > { %v773_v8 = vsub.s32 0, %v772_v3  ;;  %v755_v9 = vpack.c.bf16 %v741_v6, %v740_v7  ;;  %v744_v15 = vld [vmem:[%s2997_s26 + $0x30] sm:$0xff]  ;;  %v756_v18 = vpack.c.bf16 %v743_v11, %v742_v12  ;;  %v745_v19 = vld [vmem:[%s2997_s26 + $0x38] sm:$0xff]  ;;  %v746_v23 = vld [vmem:[%s2997_s26 + $0x40] sm:$0xff] }
 0x1b2   : > { %2129 = vmatpush3.bf16.xpose.msra.mxu0 %v754_v4  ;;  %1972 = vmatprep.subr.bf16.mxu1 %v754_v4  ;;  %v757_v22 = vpack.c.bf16 %v745_v19, %v744_v15  ;;  %v747_v24 = vld [vmem:[%s2997_s26 + $0x48] sm:$0xff]  ;;  %v748_v28 = vld [vmem:[%s2997_s26 + $0x50] sm:$0xff]  ;;  %v749_v29 = vld [vmem:[%s2997_s26 + $0x58] sm:$0xff] }
 0x1b3   : > { %v3008_v10 = vrot.slane %v3003_v5, %v773_v8  ;;  %2130 = vmatprep.subr.bf16.mxu0 %v2669_v63  ;;  %1973 = vmatpush3.bf16.msra.mxu1 %v754_v4  ;;  %v758_v26 = vpack.c.bf16 %v747_v24, %v746_v23  ;;  %v759_v31 = vpack.c.bf16 %v749_v29, %v748_v28  ;;  %v751_v33 = vld [vmem:[%s2997_s26 + $0x68] sm:$0xff]  ;;  %v750_v34 = vld [vmem:[%s2997_s26 + $0x60] sm:$0xff]  ;;  %v753_v40 = vld [vmem:[%s2997_s26 + $0x78] sm:$0xff] }
 0x1b4   : > { %1974 = vmatprep.subr.bf16.mxu1 %v755_v9  ;;  %v760_v36 = vpack.c.bf16 %v751_v33, %v750_v34  ;;  %v752_v41 = vld [vmem:[%s2997_s26 + $0x70] sm:$0xff]  ;;  %v2350_v38 = vld [vmem:[#allocation14 + $0x8] sm:$0xff]  }
 0x1b5   : > { %v777_v13 = vmul.f32 %v3008_v10, %v740_v7  ;;  %v775_v14 = vmul.f32 %v3008_v10, %v738_v1  ;;  %v778_v16 = vmul.f32 %v3008_v10, %v741_v6  ;;  %v776_v17 = vmul.f32 %v3008_v10, %v739_v2 }
 0x1b6   : > { %v780_v20 = vmul.f32 %v3008_v10, %v743_v11  ;;  %v779_v21 = vmul.f32 %v3008_v10, %v742_v12  ;;  %v782_v25 = vmul.f32 %v3008_v10, %v745_v19  ;;  %v781_v27 = vmul.f32 %v3008_v10, %v744_v15 }
 0x1b7   : > { %795 = vadd.xlane.f32.xlu1 %v777_v13  ;;  %791 = vadd.xlane.f32.xlu0 %v775_v14  ;;  %v784_v30 = vmul.f32 %v3008_v10, %v747_v24  ;;  %v783_v32 = vmul.f32 %v3008_v10, %v746_v23  ;;  %v786_v35 = vmul.f32 %v3008_v10, %v749_v29 }
 0x1b8   : > { %1975 = vmatpush3.bf16.msra.mxu1 %v755_v9  ;;  %v785_v37 = vmul.f32 %v3008_v10, %v748_v28  ;;  %v788_v39 = vmul.f32 %v3008_v10, %v751_v33  ;;  %v787_v42 = vmul.f32 %v3008_v10, %v750_v34  ;;  %v761_v43 = vpack.c.bf16 %v753_v40, %v752_v41  ;;  %v2349_v28 = vld [vmem:[#allocation14] sm:$0xff]  }
 0x1b9   : > { %1976 = vmatprep.subr.bf16.mxu1 %v756_v18  ;;  %v790_v44 = vmul.f32 %v3008_v10, %v753_v40  ;;  %v789_v45 = vmul.f32 %v3008_v10, %v752_v41 }
 0x1ba   : > { %2132 = vmatpush3.bf16.xpose.msra.mxu0 %v755_v9 }
 0x1bb   : > { %797 = vadd.xlane.f32.xlu1 %v778_v16  ;;  %793 = vadd.xlane.f32.xlu0 %v776_v17 }
 0x1bc   : > { %2133 = vmatprep.subr.bf16.mxu0 %v2669_v63  ;;  %1977 = vmatpush3.bf16.msra.mxu1 %v756_v18 }
 0x1bd   : > { %1978 = vmatprep.subr.bf16.mxu1 %v757_v22 }
 0x1bf   : > { %801 = vadd.xlane.f32.xlu1 %v780_v20  ;;  %799 = vadd.xlane.f32.xlu0 %v779_v21 }
 0x1c0   : > { %1979 = vmatpush3.bf16.msra.mxu1 %v757_v22 }
 0x1c1   : > { %1980 = vmatprep.subr.bf16.mxu1 %v758_v26 }
 0x1c2   : > { %2135 = vmatpush3.bf16.xpose.msra.mxu0 %v756_v18 }
 0x1c3   : > { %805 = vadd.xlane.f32.xlu1 %v782_v25  ;;  %2136 = vmatprep.subr.bf16.mxu0 %v2669_v63 }
 0x1c4   : > { %803 = vadd.xlane.f32.xlu0 %v781_v27  ;;  %1981 = vmatpush3.bf16.msra.mxu1 %v758_v26 }
 0x1c5   : > { %1982 = vmatprep.subr.bf16.mxu1 %v759_v31 }
 0x1c7   : > { %809 = vadd.xlane.f32.xlu1 %v784_v30 }
 0x1c8   : > { %807 = vadd.xlane.f32.xlu0 %v783_v32  ;;  %1983 = vmatpush3.bf16.msra.mxu1 %v759_v31 }
 0x1c9   : > { %1984 = vmatprep.subr.bf16.mxu1 %v760_v36 }
 0x1ca   : > { %2138 = vmatpush3.bf16.xpose.msra.mxu0 %v757_v22 }
 0x1cb   : > { %813 = vadd.xlane.f32.xlu1 %v786_v35  ;;  %2139 = vmatprep.subr.bf16.mxu0 %v2669_v63 }
 0x1cc   : > { %811 = vadd.xlane.f32.xlu0 %v785_v37  ;;  %1985 = vmatpush3.bf16.msra.mxu1 %v760_v36 }
 0x1cd   : > { %1986 = vmatprep.subr.bf16.mxu1 %v761_v43 }
 0x1cf   : > { %817 = vadd.xlane.f32.xlu1 %v788_v39 }
 0x1d0   : > { %815 = vadd.xlane.f32.xlu0 %v787_v42  ;;  %1987 = vmatpush3.bf16.msra.mxu1 %v761_v43 }
 0x1d2   : > { %2141 = vmatpush3.bf16.xpose.msra.mxu0 %v758_v26 }
 0x1d3   : > { %821 = vadd.xlane.f32.xlu1 %v790_v44  ;;  %2142 = vmatprep.subr.bf16.mxu0 %v2669_v63 }
 0x1d4   : > { %819 = vadd.xlane.f32.xlu0 %v789_v45 }
 0x1da   : > { %2144 = vmatpush3.bf16.xpose.msra.mxu0 %v759_v31 }
 0x1db   : > { %2145 = vmatprep.subr.bf16.mxu0 %v2669_v63 }
 0x1e2   : > { %2147 = vmatpush3.bf16.xpose.msra.mxu0 %v760_v36 }
 0x1e3   : > { %2148 = vmatprep.subr.bf16.mxu0 %v2669_v63 }
 0x1ea   : > { %2150 = vmatpush3.bf16.xpose.msra.mxu0 %v761_v43 }
 0x1f1   : > { %1970 = vmatmul.mubr.f32.vlgmr.msra.gmra.mrb[0].mxu0 %v841_v46 }
 0x244   : > { %v796_v47 = vpop.xlane.xlu1 %795  ;;  %v792_v48 = vpop.xlane.xlu0 %791 }
 0x245   : > { %826 = vst.msk [vmem:[#allocation5 + $0x10] sm:$0xff] %vm823_vm1, %v796_v47  ;;  %824 = vst.msk [vmem:[#allocation5] sm:$0xff] %vm823_vm1, %v792_v48 }
 0x248   : > { %v798_v49 = vpop.xlane.xlu1 %797  ;;  %v794_v50 = vpop.xlane.xlu0 %793 }
 0x249   : > { %827 = vst.msk [vmem:[#allocation5 + $0x18] sm:$0xff] %vm823_vm1, %v798_v49  ;;  %825 = vst.msk [vmem:[#allocation5 + $0x8] sm:$0xff] %vm823_vm1, %v794_v50  ;;  %v2351_v49 = vld [vmem:[#allocation14 + $0x10] sm:$0xff]  }
 0x24c   : > { %v802_v51 = vpop.xlane.xlu1 %801  ;;  %v936_v52 = vld [vmem:[#allocation5] sm:$0xff]  ;;  %v800_v53 = vpop.xlane.xlu0 %799  ;;  %v938_v57 = vld [vmem:[#allocation5 + $0x10] sm:$0xff] }
 0x24d   : > { %829 = vst.msk [vmem:[#allocation5 + $0x28] sm:$0xff] %vm823_vm1, %v802_v51  ;;  %955 = vperm.xlu0 %2347, %v936_v52   ;;  %828 = vst.msk [vmem:[#allocation5 + $0x20] sm:$0xff] %vm823_vm1, %v800_v53 }
 0x250   : > { %v806_v54 = vpop.xlane.xlu1 %805  ;;  %v937_v55 = vld [vmem:[#allocation5 + $0x8] sm:$0xff]  ;;  %v939_v60 = vld [vmem:[#allocation5 + $0x18] sm:$0xff] }
 0x251   : > { %831 = vst.msk [vmem:[#allocation5 + $0x38] sm:$0xff] %vm823_vm1, %v806_v54  ;;  %960 = vperm.xlu1 %2348, %v937_v55   ;;  %v804_v56 = vpop.xlane.xlu0 %803 }
 0x252   : > { %830 = vst.msk [vmem:[#allocation5 + $0x30] sm:$0xff] %vm823_vm1, %v804_v56 }
 0x254   : > { %v810_v58 = vpop.xlane.xlu1 %809  ;;  %v940_v63 = vld [vmem:[#allocation5 + $0x20] sm:$0xff]  ;;  %v941_v3 = vld [vmem:[#allocation5 + $0x28] sm:$0xff] }
 0x255   : > { %833 = vst.msk [vmem:[#allocation5 + $0x48] sm:$0xff] %vm823_vm1, %v810_v58  ;;  %965 = vperm.xlu1 %2348, %v938_v57   ;;  %v808_v59 = vpop.xlane.xlu0 %807 }
 0x256   : > { %832 = vst.msk [vmem:[#allocation5 + $0x40] sm:$0xff] %vm823_vm1, %v808_v59 }
 0x258   : > { %v814_v61 = vpop.xlane.xlu1 %813  ;;  %v943_v9 = vld [vmem:[#allocation5 + $0x38] sm:$0xff] }
 0x259   : > { %835 = vst.msk [vmem:[#allocation5 + $0x58] sm:$0xff] %vm823_vm1, %v814_v61  ;;  %970 = vperm.xlu1 %2348, %v939_v60   ;;  %v812_v62 = vpop.xlane.xlu0 %811  ;;  %v942_v7 = vld [vmem:[#allocation5 + $0x30] sm:$0xff] }
 0x25a   : > { %834 = vst.msk [vmem:[#allocation5 + $0x50] sm:$0xff] %vm823_vm1, %v812_v62  ;;  %v2352_v62 = vld [vmem:[#allocation14 + $0x18] sm:$0xff]  }
 0x25c   : > { %v818_v0 = vpop.xlane.xlu1 %817  ;;  %v945_v1 = vld [vmem:[#allocation5 + $0x48] sm:$0xff] }
 0x25d   : > { %837 = vst.msk [vmem:[#allocation5 + $0x68] sm:$0xff] %vm823_vm1, %v818_v0  ;;  %1000 = vperm.xlu0 %2347, %v945_v1   ;;  %975 = vperm.xlu1 %2348, %v940_v63   ;;  %v816_v2 = vpop.xlane.xlu0 %815  ;;  %v944_v11 = vld [vmem:[#allocation5 + $0x40] sm:$0xff] }
 0x25e   : > { %836 = vst.msk [vmem:[#allocation5 + $0x60] sm:$0xff] %vm823_vm1, %v816_v2 }
 0x260   : > { %v822_v4 = vpop.xlane.xlu1 %821  ;;  %v947_v5 = vld [vmem:[#allocation5 + $0x58] sm:$0xff] }
 0x261   : > { %839 = vst.msk [vmem:[#allocation5 + $0x78] sm:$0xff] %vm823_vm1, %v822_v4  ;;  %1010 = vperm.xlu0 %2347, %v947_v5   ;;  %980 = vperm.xlu1 %2348, %v941_v3   ;;  %v820_v6 = vpop.xlane.xlu0 %819  ;;  %v946_v12 = vld [vmem:[#allocation5 + $0x50] sm:$0xff] }
 0x262   : > { %838 = vst.msk [vmem:[#allocation5 + $0x70] sm:$0xff] %vm823_vm1, %v820_v6  ;;  %v2353_v6 = vld [vmem:[#allocation14 + $0x20] sm:$0xff]  }
 0x264   : > { %v949_v8 = vld [vmem:[#allocation5 + $0x68] sm:$0xff] }
 0x265   : > { %1020 = vperm.xlu0 %2347, %v949_v8   ;;  %985 = vperm.xlu1 %2348, %v942_v7   ;;  %v948_v13 = vld [vmem:[#allocation5 + $0x60] sm:$0xff] }
 0x268   : > { %v951_v10 = vld [vmem:[#allocation5 + $0x78] sm:$0xff] }
 0x269   : > { %1030 = vperm.xlu0 %2347, %v951_v10   ;;  %990 = vperm.xlu1 %2348, %v943_v9   ;;  %v950_v14 = vld [vmem:[#allocation5 + $0x70] sm:$0xff] }
 0x26d   : > { %995 = vperm.xlu1 %2348, %v944_v11  }
 0x271   : > { %1005 = vperm.xlu1 %2348, %v946_v12   ;;  %v2354_v12 = vld [vmem:[#allocation14 + $0x28] sm:$0xff]  }
 0x275   : > { %1015 = vperm.xlu1 %2348, %v948_v13  }
 0x279   : > { %1025 = vperm.xlu1 %2348, %v950_v14  }
 0x2c4   : > { %v909_v15 = vpop.f32.mrb[0].mxu0 }
 0x2c5   : > { %913 = vst [vmem:[#allocation6] sm:$0x1] %v909_v15  ;;  %v1971_v16 = vpop.f32.mrb[1].mxu0 }
 0x2cc   : > { %v3062_v17 = vld [vmem:[#allocation6] ss:$0 sm:$0xff]  ;;  %v956_v18 = vpop.permute.xlu0 %955 }
 0x2cd   : > { %v1039_v19 = vadd.f32 %v3062_v17, %v956_v18  ;;  %v2355_v18 = vld [vmem:[#allocation14 + $0x30] sm:$0xff]  }
 0x2cf   : > { %2357 = vtanh.f32 %v1039_v19 }
 0x2d0   : > { %v961_v20 = vpop.permute.xlu1 %960 }
 0x2d1   : > { %v1040_v21 = vadd.f32 %v3062_v17, %v961_v20 }
 0x2d3   : > { %2359 = vtanh.f32 %v1040_v21 }
 0x2d4   : > { %v966_v22 = vpop.permute.xlu1 %965 }
 0x2d5   : > { %v1041_v23 = vadd.f32 %v3062_v17, %v966_v22  ;;  %v2356_v22 = vld [vmem:[#allocation14 + $0x38] sm:$0xff]  }
 0x2d7   : > { %2361 = vtanh.f32 %v1041_v23 }
 0x2d8   : > { %v971_v24 = vpop.permute.xlu1 %970 }
 0x2d9   : > { %v1042_v25 = vadd.f32 %v3062_v17, %v971_v24  ;;  %v2358_v26 = vpop.eup %2357 }
 0x2db   : > { %2363 = vtanh.f32 %v1042_v25 }
 0x2dc   : > { %v976_v27 = vpop.permute.xlu1 %975  ;;  %v1001_v34 = vpop.permute.xlu0 %1000 }
 0x2dd   : > { %v2360_v29 = vpop.eup %2359  ;;  %v1043_v30 = vadd.f32 %v3062_v17, %v976_v27  ;;  %v1048_v46 = vadd.f32 %v3062_v17, %v1001_v34  ;;  %v3082_v27 = vstv %s2985_s10 }
 0x2de   : > { %v1071_v31 = vpack.c.bf16 %v2360_v29, %v2358_v26  ;;  %v1245_v26 = vld [vmem:[#allocation4 + $0x10] sm:$0xff]  ;;  %v1246_v29 = vld [vmem:[#allocation4 + $0x18] sm:$0xff] }
 0x2df   : > { %2365 = vtanh.f32 %v1043_v30  ;;  %v1262_v30 = vmul.f32 %v3082_v27, %v1245_v26 }
 0x2e0   : > { %v981_v32 = vpop.permute.xlu1 %980  ;;  %v1127_v33 = vmul.bf16 %v2349_v28, %v1071_v31  ;;  %v1011_v42 = vpop.permute.xlu0 %1010  ;;  %v1243_v28 = vld [vmem:[#allocation4] sm:$0xff]  ;;  %v1244_v31 = vld [vmem:[#allocation4 + $0x8] sm:$0xff] }
 0x2e1   : > { %v1044_v35 = vadd.f32 %v3062_v17, %v981_v32  ;;  %v2362_v36 = vpop.eup %2361  ;;  %v1050_v53 = vadd.f32 %v3062_v17, %v1011_v42  ;;  %v1260_v32 = vmul.f32 %v3082_v27, %v1243_v28  ;;  %v1330_v28 = vld [vmem:[#allocation15] sm:$0xff] (%p1309_p1) }
 0x2e2   : > { %1988 = vmatprep.mubr.bf16.mxu1 %v1127_v33  ;;  %v1263_v33 = vmul.f32 %v3082_v27, %v1246_v29  ;;  %v1331_v29 = vld [vmem:[#allocation15 + $0x8] sm:$0xff] (%p1309_p1) }
 0x2e3   : > { %2367 = vtanh.f32 %v1044_v35  ;;  %v1261_v35 = vmul.f32 %v3082_v27, %v1244_v31  ;;  %v2151_v31 = vpack.c.bf16 (%p1309_p1), %v1331_v29, %v1330_v28 }
 0x2e4   : > { %v986_v37 = vpop.permute.xlu1 %985  ;;  %v1021_v51 = vpop.permute.xlu0 %1020 }
 0x2e5   : > { %v2364_v39 = vpop.eup %2363  ;;  %v1045_v40 = vadd.f32 %v3062_v17, %v986_v37  ;;  %v1052_v58 = vadd.f32 %v3062_v17, %v1021_v51  ;;  %2152 = vmatprep.subr.bf16.mxu0 (%p1309_p1), %v2151_v31 }
 0x2e6   : > { %v1072_v41 = vpack.c.bf16 %v2364_v39, %v2362_v36  ;;  %2154 = vmatpush3.bf16.msra.mxu0 (%p1309_p1), %v2151_v31 }
 0x2e7   : > { %2369 = vtanh.f32 %v1045_v40 }
 0x2e8   : > { %v991_v43 = vpop.permute.xlu1 %990  ;;  %v1128_v44 = vmul.bf16 %v2350_v38, %v1072_v41  ;;  %v1031_v59 = vpop.permute.xlu0 %1030 }
 0x2e9   : > { %v1046_v45 = vadd.f32 %v3062_v17, %v991_v43  ;;  %v2366_v47 = vpop.eup %2365  ;;  %v1054_v1 = vadd.f32 %v3062_v17, %v1031_v59  ;;  %v1249_v43 = vld [vmem:[#allocation4 + $0x30] sm:$0xff]  ;;  %v1251_v59 = vld [vmem:[#allocation4 + $0x40] sm:$0xff] }
 0x2ea   : > { %1989 = vmatmul.mubr.bf16.vlgmr.msra.gmra.mrb[0].mxu1 %v1128_v44  ;;  %v1247_v44 = vld [vmem:[#allocation4 + $0x20] sm:$0xff] }
 0x2eb   : > { %2371 = vtanh.f32 %v1046_v45  ;;  %v1250_v45 = vld [vmem:[#allocation4 + $0x38] sm:$0xff] }
 0x2ec   : > { %v996_v48 = vpop.permute.xlu1 %995  ;;  %2373 = vtanh.f32 %v1048_v46  ;;  %v1266_v46 = vmul.f32 %v3082_v27, %v1249_v43  ;;  %v1340_v43 = vld [vmem:[#allocation15 + $0x50] sm:$0xff] (%p1309_p1) }
 0x2ed   : > { %v2368_v50 = vpop.eup %2367  ;;  %v1047_v52 = vadd.f32 %v3062_v17, %v996_v48  ;;  %v1264_v48 = vmul.f32 %v3082_v27, %v1247_v44  ;;  %v1341_v44 = vld [vmem:[#allocation15 + $0x58] sm:$0xff] (%p1309_p1) }
 0x2ee   : > { %v1073_v54 = vpack.c.bf16 %v2368_v50, %v2366_v47  ;;  %v1248_v47 = vld [vmem:[#allocation4 + $0x28] sm:$0xff] }
 0x2ef   : > { %2375 = vtanh.f32 %v1047_v52  ;;  %v1265_v51 = vmul.f32 %v3082_v27, %v1248_v47  ;;  %v1343_v47 = vld [vmem:[#allocation15 + $0x68] sm:$0xff] (%p1309_p1) }
 0x2f0   : > { %v1006_v55 = vpop.permute.xlu1 %1005  ;;  %v1129_v56 = vmul.bf16 %v2351_v49, %v1073_v54  ;;  %2377 = vtanh.f32 %v1050_v53  ;;  %v1267_v49 = vmul.f32 %v3082_v27, %v1250_v45  ;;  %v2171_v45 = vpack.c.bf16 (%p1309_p1), %v1341_v44, %v1340_v43 }
 0x2f1   : > { %v1049_v57 = vadd.f32 %v3062_v17, %v1006_v55  ;;  %v2370_v60 = vpop.eup %2369 }
 0x2f2   : > { %1992 = vmatprep.mubr.bf16.mxu1 %v1129_v56  ;;  %v1253_v56 = vld [vmem:[#allocation4 + $0x50] sm:$0xff] }
 0x2f3   : > { %2379 = vtanh.f32 %v1049_v57 }
 0x2f4   : > { %v1016_v61 = vpop.permute.xlu1 %1015  ;;  %2381 = vtanh.f32 %v1052_v58 }
 0x2f5   : > { %v2372_v63 = vpop.eup %2371  ;;  %v1051_v0 = vadd.f32 %v3062_v17, %v1016_v61  ;;  %v1254_v61 = vld [vmem:[#allocation4 + $0x58] sm:$0xff] }
 0x2f6   : > { %v1074_v2 = vpack.c.bf16 %v2372_v63, %v2370_v60  ;;  %v2374_v3 = vpop.eup %2373  ;;  %v1252_v63 = vld [vmem:[#allocation4 + $0x48] sm:$0xff] }
 0x2f7   : > { %2383 = vtanh.f32 %v1051_v0  ;;  %v1268_v0 = vmul.f32 %v3082_v27, %v1251_v59 }
 0x2f8   : > { %v1026_v4 = vpop.permute.xlu1 %1025  ;;  %v1130_v5 = vmul.bf16 %v2352_v62, %v1074_v2  ;;  %2385 = vtanh.f32 %v1054_v1  ;;  %v1270_v62 = vmul.f32 %v3082_v27, %v1253_v56  ;;  %v1271_v1 = vmul.f32 %v3082_v27, %v1254_v61 }
 0x2f9   : > { %v2376_v7 = vpop.eup %2375  ;;  %v1053_v8 = vadd.f32 %v3062_v17, %v1026_v4 }
 0x2fa   : > { %1993 = vmatmul.mubr.bf16.gmra.mrb[4].mxu1 %v1130_v5  ;;  %v1075_v9 = vpack.c.bf16 %v2374_v3, %v2376_v7  ;;  %v2378_v10 = vpop.eup %2377  ;;  %v1269_v3 = vmul.f32 %v3082_v27, %v1252_v63 }
 0x2fb   : > { %2387 = vtanh.f32 %v1053_v8  ;;  %v1257_v8 = vld [vmem:[#allocation4 + $0x70] sm:$0xff] }
 0x2fc   : > { %v1131_v11 = vmul.bf16 %v2353_v6, %v1075_v9 }
 0x2fd   : > { %v2380_v13 = vpop.eup %2379 }
 0x2fe   : > { %1996 = vmatprep.mubr.bf16.mxu1 %v1131_v11  ;;  %v1076_v14 = vpack.c.bf16 %v2378_v10, %v2380_v13  ;;  %v2382_v15 = vpop.eup %2381  ;;  %v1255_v11 = vld [vmem:[#allocation4 + $0x60] sm:$0xff]  ;;  %v1258_v13 = vld [vmem:[#allocation4 + $0x78] sm:$0xff] }
 0x300   : > { %v1132_v16 = vmul.bf16 %v2354_v12, %v1076_v14  ;;  %v1274_v14 = vmul.f32 %v3082_v27, %v1257_v8 }
 0x301   : > { %v2384_v19 = vpop.eup %2383 }
 0x302   : > { %1997 = vmatmul.mubr.bf16.gmra.mrb[8].mxu1 %v1132_v16  ;;  %v1077_v20 = vpack.c.bf16 %v2382_v15, %v2384_v19  ;;  %v2386_v17 = vpop.eup %2385  ;;  %v1256_v15 = vld [vmem:[#allocation4 + $0x68] sm:$0xff]  ;;  %v1272_v16 = vmul.f32 %v3082_v27, %v1255_v11 }
 0x304   : > { %v1133_v21 = vmul.bf16 %v2355_v18, %v1077_v20  ;;  %v1275_v18 = vmul.f32 %v3082_v27, %v1258_v13  ;;  %v1273_v20 = vmul.f32 %v3082_v27, %v1256_v15 }
 0x305   : > { %v2388_v23 = vpop.eup %2387 }
 0x306   : > { %2000 = vmatprep.mubr.bf16.mxu1 %v1133_v21  ;;  %v1078_v24 = vpack.c.bf16 %v2386_v17, %v2388_v23 }
 0x308   : > { %v1134_v25 = vmul.bf16 %v2356_v22, %v1078_v24 }
 0x30a   : > { %2001 = vmatmul.mubr.bf16.gmra.mrb[12].mxu1 %v1134_v25 }
 0x3bd   : > { %v1990_v34 = vpop.f32.mrb[0].mxu1 }
 0x3be   : > { %v1278_v36 = vadd.f32 %v1990_v34, %v1262_v30  ;;  %v1177_v37 = vpop.f32.mrb[1].mxu1  ;;  %v1332_v30 = vld [vmem:[#allocation15 + $0x10] sm:$0xff] (%p1309_p1)  ;;  %v1335_v34 = vld [vmem:[#allocation15 + $0x28] sm:$0xff] (%p1309_p1) }
 0x3bf   : > { %v1276_v38 = vadd.f32 %v1260_v32, %v1177_v37  ;;  %v1991_v39 = vpop.f32.mrb[2].mxu1  ;;  %v1333_v32 = vld [vmem:[#allocation15 + $0x18] sm:$0xff] (%p1309_p1)  ;;  %v1336_v37 = vld [vmem:[#allocation15 + $0x30] sm:$0xff] (%p1309_p1) }
 0x3c0   : > { %1295 = vst [vmem:[%s3090_s28 + $0x10] sm:$0xff] %v1278_v36  ;;  %v1279_v40 = vadd.f32 %v1991_v39, %v1263_v33  ;;  %v1180_v41 = vpop.f32.mrb[3].mxu1  ;;  %v2155_v27 = vpack.c.bf16 (%p1309_p1), %v1333_v32, %v1332_v30  ;;  %v1334_v33 = vld [vmem:[#allocation15 + $0x20] sm:$0xff] (%p1309_p1) }
 0x3c1   : > { %1293 = vst [vmem:[%s3090_s28] sm:$0xff] %v1276_v38  ;;  %v1277_v42 = vadd.f32 %v1261_v35, %v1180_v41  ;;  %v2159_v35 = vpack.c.bf16 (%p1309_p1), %v1335_v34, %v1334_v33  ;;  %v1337_v38 = vld [vmem:[#allocation15 + $0x38] sm:$0xff] (%p1309_p1)  ;;  %v1339_v41 = vld [vmem:[#allocation15 + $0x48] sm:$0xff] (%p1309_p1) }
 0x3c2   : > { %1296 = vst [vmem:[%s3090_s28 + $0x18] sm:$0xff] %v1279_v40  ;;  %2156 = vmatprep.subr.bf16.mxu0 (%p1309_p1), %v2155_v27  ;;  %v2163_v39 = vpack.c.bf16 (%p1309_p1), %v1337_v38, %v1336_v37  ;;  %v1338_v40 = vld [vmem:[#allocation15 + $0x40] sm:$0xff] (%p1309_p1) }
 0x3c3   : > { %1294 = vst [vmem:[%s3090_s28 + $0x8] sm:$0xff] %v1277_v42  ;;  %2158 = vmatpush3.bf16.msra.mxu0 (%p1309_p1), %v2155_v27  ;;  %v2167_v42 = vpack.c.bf16 (%p1309_p1), %v1339_v41, %v1338_v40 }
 0x3c4   : > { %2160 = vmatprep.subr.bf16.mxu0 (%p1309_p1), %v2159_v35 }
 0x3c7   : > { %2162 = vmatpush3.bf16.msra.mxu0 (%p1309_p1), %v2159_v35 }
 0x3c8   : > { %2164 = vmatprep.subr.bf16.mxu0 (%p1309_p1), %v2163_v39 }
 0x3cb   : > { %2166 = vmatpush3.bf16.msra.mxu0 (%p1309_p1), %v2163_v39 }
 0x3cc   : > { %2168 = vmatprep.subr.bf16.mxu0 (%p1309_p1), %v2167_v42 }
 0x3cd   : > { %v1994_v50 = vpop.f32.mrb[4].mxu1 }
 0x3ce   : > { %v1282_v52 = vadd.f32 %v1994_v50, %v1266_v46  ;;  %v1193_v53 = vpop.f32.mrb[5].mxu1  ;;  %v1342_v46 = vld [vmem:[#allocation15 + $0x60] sm:$0xff] (%p1309_p1)  ;;  %v1345_v50 = vld [vmem:[#allocation15 + $0x78] sm:$0xff] (%p1309_p1) }
 0x3cf   : > { %v1280_v54 = vadd.f32 %v1264_v48, %v1193_v53  ;;  %v1995_v55 = vpop.f32.mrb[6].mxu1  ;;  %2170 = vmatpush3.bf16.msra.mxu0 (%p1309_p1), %v2167_v42  ;;  %v2175_v48 = vpack.c.bf16 (%p1309_p1), %v1343_v47, %v1342_v46  ;;  %v1514_v46 = vld [vmem:[%s3262_s14] sm:$0xff] (%p1309_p1) }
 0x3d0   : > { %1299 = vst [vmem:[%s3090_s28 + $0x30] sm:$0xff] %v1282_v52  ;;  %v1283_v57 = vadd.f32 %v1995_v55, %v1267_v49  ;;  %v1196_v58 = vpop.f32.mrb[7].mxu1  ;;  %2172 = vmatprep.subr.bf16.mxu0 (%p1309_p1), %v2171_v45  ;;  %v1344_v49 = vld [vmem:[#allocation15 + $0x70] sm:$0xff] (%p1309_p1) }
 0x3d1   : > { %1297 = vst [vmem:[%s3090_s28 + $0x20] sm:$0xff] %v1280_v54  ;;  %v1281_v60 = vadd.f32 %v1265_v51, %v1196_v58  ;;  %v2179_v51 = vpack.c.bf16 (%p1309_p1), %v1345_v50, %v1344_v49 }
 0x3d2   : > { %1300 = vst [vmem:[%s3090_s28 + $0x38] sm:$0xff] %v1283_v57 }
 0x3d3   : > { %1298 = vst [vmem:[%s3090_s28 + $0x28] sm:$0xff] %v1281_v60  ;;  %2174 = vmatpush3.bf16.msra.mxu0 (%p1309_p1), %v2171_v45 }
 0x3d4   : > { %2176 = vmatprep.subr.bf16.mxu0 (%p1309_p1), %v2175_v48 }
 0x3d5   : > { %v1998_v2 = vpop.f32.mrb[8].mxu1 }
 0x3d6   : > { %v1286_v4 = vadd.f32 %v1998_v2, %v1270_v62  ;;  %v1209_v5 = vpop.f32.mrb[9].mxu1 }
 0x3d7   : > { %v1284_v6 = vadd.f32 %v1268_v0, %v1209_v5  ;;  %v1999_v7 = vpop.f32.mrb[10].mxu1  ;;  %2178 = vmatpush3.bf16.msra.mxu0 (%p1309_p1), %v2175_v48  ;;  %v3126_v5 = vld [vmem:[%s3231_s7] ss:$0 sm:$0xff] (%p1309_p1) }
 0x3d8   : > { %1303 = vst [vmem:[%s3090_s28 + $0x50] sm:$0xff] %v1286_v4  ;;  %v1287_v9 = vadd.f32 %v1999_v7, %v1271_v1  ;;  %v1212_v10 = vpop.f32.mrb[11].mxu1  ;;  %2180 = vmatprep.subr.bf16.mxu0 (%p1309_p1), %v2179_v51  ;;  %v2675_v4 = vmov (%p1309_p1), 0.0  }
 0x3d9   : > { %1301 = vst [vmem:[%s3090_s28 + $0x40] sm:$0xff] %v1284_v6  ;;  %v1285_v12 = vadd.f32 %v1269_v3, %v1212_v10  ;;  %v2673_v3 = vmov (%p1309_p1), 0.0|0.0   ;;  %2092 = vmatprep.mubr.msk.f32.mxu1 (%p1309_p1), %vm2674_vm2, %v2675_v4 }
 0x3da   : > { %1304 = vst [vmem:[%s3090_s28 + $0x58] sm:$0xff] %v1287_v9  ;;  %2183 = vmatprep.subr.bf16.mxu1 (%p1309_p1), %v2673_v3 }
 0x3db   : > { %1302 = vst [vmem:[%s3090_s28 + $0x48] sm:$0xff] %v1285_v12  ;;  %2182 = vmatpush3.bf16.msra.mxu0 (%p1309_p1), %v2179_v51 }
 0x3dd   : > { %v2002_v19 = vpop.f32.mrb[12].mxu1  ;;  %1313 = sbr.rel (!%p1309_p1) target bundleno = 1465 (0x5b9), region = 88 }
 0x3de   : > { %v1290_v17 = vadd.f32 %v2002_v19, %v1274_v14  ;;  %v1225_v21 = vpop.f32.mrb[13].mxu1 }
 0x3df   : > { %v1288_v22 = vadd.f32 %v1272_v16, %v1225_v21  ;;  %v2003_v23 = vpop.f32.mrb[14].mxu1 }
 0x3e0   : > { %1307 = vst [vmem:[%s3090_s28 + $0x70] sm:$0xff] %v1290_v17  ;;  %v1291_v24 = vadd.f32 %v2003_v23, %v1275_v18  ;;  %v1228_v25 = vpop.f32.mrb[15].mxu1 }
 0x3e1   : > { %1305 = vst [vmem:[%s3090_s28 + $0x60] sm:$0xff] %v1288_v22  ;;  %v1289_v26 = vadd.f32 %v1273_v20, %v1228_v25 }
 0x3e2   : > { %1308 = vst [vmem:[%s3090_s28 + $0x78] sm:$0xff] %v1291_v24 }
 0x3e3   : > { %1306 = vst [vmem:[%s3090_s28 + $0x68] sm:$0xff] %v1289_v26 }
 0x3ea   : > { %v1314_v36 = vld [vmem:[#allocation2] sm:$0xff]  ;;  %v1315_v52 = vld [vmem:[#allocation2 + $0x8] sm:$0xff]  ;;  %v1316_v53 = vld [vmem:[#allocation2 + $0x10] sm:$0xff] }
 0x3eb   : > { %2036 = vmatprep.mubr.f32.mxu0 %v1314_v36  ;;  %v1317_v54 = vld [vmem:[#allocation2 + $0x18] sm:$0xff]  ;;  %v1318_v55 = vld [vmem:[#allocation2 + $0x20] sm:$0xff]  ;;  %v1319_v56 = vld [vmem:[#allocation2 + $0x28] sm:$0xff] }
 0x3ec   : > { %2037 = vmatmul.mubr.f32.vlgmr.msra.gmra.mrb[0].mxu0 %v1315_v52  ;;  %v1320_v57 = vld [vmem:[#allocation2 + $0x30] sm:$0xff]  ;;  %v1321_v58 = vld [vmem:[#allocation2 + $0x38] sm:$0xff]  ;;  %v1322_v59 = vld [vmem:[#allocation2 + $0x40] sm:$0xff] }
 0x3ed   : > { %2039 = vmatprep.mubr.f32.mxu0 %v1316_v53  ;;  %v1323_v60 = vld [vmem:[#allocation2 + $0x48] sm:$0xff]  ;;  %v1324_v61 = vld [vmem:[#allocation2 + $0x50] sm:$0xff]  ;;  %v1325_v62 = vld [vmem:[#allocation2 + $0x58] sm:$0xff] }
 0x3ee   : > { %v1326_v63 = vld [vmem:[#allocation2 + $0x60] sm:$0xff]  ;;  %v1327_v0 = vld [vmem:[#allocation2 + $0x68] sm:$0xff]  ;;  %v1328_v1 = vld [vmem:[#allocation2 + $0x70] sm:$0xff] }
 0x3ef   : > { %v1329_v2 = vld [vmem:[#allocation2 + $0x78] sm:$0xff] }
 0x3f0   : > { %2040 = vmatmul.mubr.f32.gmra.mrb[2].mxu0 %v1317_v54 }
 0x3f1   : > { %2042 = vmatprep.mubr.f32.mxu0 %v1318_v55 }
 0x3f4   : > { %2043 = vmatmul.mubr.f32.gmra.mrb[4].mxu0 %v1319_v56 }
 0x3f5   : > { %2045 = vmatprep.mubr.f32.mxu0 %v1320_v57 }
 0x3f8   : > { %2046 = vmatmul.mubr.f32.gmra.mrb[6].mxu0 %v1321_v58 }
 0x3f9   : > { %2048 = vmatprep.mubr.f32.mxu0 %v1322_v59 }
 0x3fc   : > { %2049 = vmatmul.mubr.f32.gmra.mrb[8].mxu0 %v1323_v60 }
 0x3fd   : > { %2051 = vmatprep.mubr.f32.mxu0 %v1324_v61 }
 0x400   : > { %2052 = vmatmul.mubr.f32.gmra.mrb[10].mxu0 %v1325_v62 }
 0x401   : > { %2054 = vmatprep.mubr.f32.mxu0 %v1326_v63 }
 0x404   : > { %2055 = vmatmul.mubr.f32.gmra.mrb[12].mxu0 %v1327_v0 }
 0x405   : > { %2057 = vmatprep.mubr.f32.mxu0 %v1328_v1 }
 0x408   : > { %2058 = vmatmul.mubr.f32.gmra.mrb[14].mxu0 %v1329_v2 }
 0x4bf   : > { %v2038_v6 = vpop.f32.mrb[0].mxu0 }
 0x4c0   : > { %v1425_v7 = vadd.f32 %v2038_v6, %v3126_v5  ;;  %v1419_v8 = vpop.f32.mrb[1].mxu0 }
 0x4c1   : > { %v1420_v9 = vadd.f32 %v3126_v5, %v1419_v8 }
 0x4c2   : > { %1499 = vst [vmem:[#allocation18 + $0x8] sm:$0xff] %v1425_v7 }
 0x4c3   : > { %1498 = vst [vmem:[#allocation18] sm:$0xff] %v1420_v9  ;;  %v2041_v10 = vpop.f32.mrb[2].mxu0  ;;  %v2184_v11 = vpack.c.bf16 %v1425_v7, %v1420_v9 }
 0x4c4   : > { %v1435_v12 = vadd.f32 %v2041_v10, %v3126_v5  ;;  %v1429_v13 = vpop.f32.mrb[3].mxu0 }
 0x4c5   : > { %v1430_v14 = vadd.f32 %v3126_v5, %v1429_v13  ;;  %2185 = vmatpush3.bf16.msra.mxu1 %v2184_v11 }
 0x4c6   : > { %1501 = vst [vmem:[#allocation18 + $0x18] sm:$0xff] %v1435_v12  ;;  %2186 = vmatprep.subr.bf16.mxu1 %v2673_v3 }
 0x4c7   : > { %1500 = vst [vmem:[#allocation18 + $0x10] sm:$0xff] %v1430_v14  ;;  %v2187_v15 = vpack.c.bf16 %v1435_v12, %v1430_v14  ;;  %v2044_v16 = vpop.f32.mrb[4].mxu0 }
 0x4c8   : > { %v1445_v18 = vadd.f32 %v2044_v16, %v3126_v5  ;;  %v1439_v19 = vpop.f32.mrb[5].mxu0 }
 0x4c9   : > { %v1440_v20 = vadd.f32 %v3126_v5, %v1439_v19  ;;  %2188 = vmatpush3.bf16.msra.mxu1 %v2187_v15 }
 0x4ca   : > { %1503 = vst [vmem:[#allocation18 + $0x28] sm:$0xff] %v1445_v18  ;;  %2189 = vmatprep.subr.bf16.mxu1 %v2673_v3 }
 0x4cb   : > { %1502 = vst [vmem:[#allocation18 + $0x20] sm:$0xff] %v1440_v20  ;;  %v2190_v17 = vpack.c.bf16 %v1445_v18, %v1440_v20  ;;  %v2047_v21 = vpop.f32.mrb[6].mxu0 }
 0x4cc   : > { %v1455_v22 = vadd.f32 %v2047_v21, %v3126_v5  ;;  %v1449_v23 = vpop.f32.mrb[7].mxu0 }
 0x4cd   : > { %v1450_v24 = vadd.f32 %v3126_v5, %v1449_v23  ;;  %2191 = vmatpush3.bf16.msra.mxu1 %v2190_v17 }
 0x4ce   : > { %1505 = vst [vmem:[#allocation18 + $0x38] sm:$0xff] %v1455_v22  ;;  %2192 = vmatprep.subr.bf16.mxu1 %v2673_v3 }
 0x4cf   : > { %1504 = vst [vmem:[#allocation18 + $0x30] sm:$0xff] %v1450_v24  ;;  %v2193_v25 = vpack.c.bf16 %v1455_v22, %v1450_v24  ;;  %v2050_v26 = vpop.f32.mrb[8].mxu0 }
 0x4d0   : > { %v1465_v28 = vadd.f32 %v2050_v26, %v3126_v5  ;;  %v1459_v29 = vpop.f32.mrb[9].mxu0 }
 0x4d1   : > { %v1460_v30 = vadd.f32 %v3126_v5, %v1459_v29  ;;  %2194 = vmatpush3.bf16.msra.mxu1 %v2193_v25 }
 0x4d2   : > { %1507 = vst [vmem:[#allocation18 + $0x48] sm:$0xff] %v1465_v28  ;;  %2195 = vmatprep.subr.bf16.mxu1 %v2673_v3 }
 0x4d3   : > { %1506 = vst [vmem:[#allocation18 + $0x40] sm:$0xff] %v1460_v30  ;;  %v2196_v31 = vpack.c.bf16 %v1465_v28, %v1460_v30  ;;  %v2053_v32 = vpop.f32.mrb[10].mxu0 }
 0x4d4   : > { %v1475_v27 = vadd.f32 %v2053_v32, %v3126_v5  ;;  %v1469_v33 = vpop.f32.mrb[11].mxu0 }
 0x4d5   : > { %v1470_v34 = vadd.f32 %v3126_v5, %v1469_v33  ;;  %2197 = vmatpush3.bf16.msra.mxu1 %v2196_v31 }
 0x4d6   : > { %1509 = vst [vmem:[#allocation18 + $0x58] sm:$0xff] %v1475_v27  ;;  %2198 = vmatprep.subr.bf16.mxu1 %v2673_v3 }
 0x4d7   : > { %1508 = vst [vmem:[#allocation18 + $0x50] sm:$0xff] %v1470_v34  ;;  %v2199_v35 = vpack.c.bf16 %v1475_v27, %v1470_v34  ;;  %v2056_v36 = vpop.f32.mrb[12].mxu0 }
 0x4d8   : > { %v1485_v37 = vadd.f32 %v2056_v36, %v3126_v5  ;;  %v1479_v38 = vpop.f32.mrb[13].mxu0 }
 0x4d9   : > { %v1480_v39 = vadd.f32 %v3126_v5, %v1479_v38  ;;  %2200 = vmatpush3.bf16.msra.mxu1 %v2199_v35 }
 0x4da   : > { %1511 = vst [vmem:[#allocation18 + $0x68] sm:$0xff] %v1485_v37  ;;  %2201 = vmatprep.subr.bf16.mxu1 %v2673_v3 }
 0x4db   : > { %1510 = vst [vmem:[#allocation18 + $0x60] sm:$0xff] %v1480_v39  ;;  %v2202_v40 = vpack.c.bf16 %v1485_v37, %v1480_v39  ;;  %v2059_v41 = vpop.f32.mrb[14].mxu0 }
 0x4dc   : > { %v1495_v42 = vadd.f32 %v2059_v41, %v3126_v5  ;;  %v1489_v43 = vpop.f32.mrb[15].mxu0 }
 0x4dd   : > { %v1490_v44 = vadd.f32 %v3126_v5, %v1489_v43  ;;  %2203 = vmatpush3.bf16.msra.mxu1 %v2202_v40 }
 0x4de   : > { %1513 = vst [vmem:[#allocation18 + $0x78] sm:$0xff] %v1495_v42  ;;  %2204 = vmatprep.subr.bf16.mxu1 %v2673_v3 }
 0x4df   : > { %1512 = vst [vmem:[#allocation18 + $0x70] sm:$0xff] %v1490_v44  ;;  %v2205_v45 = vpack.c.bf16 %v1495_v42, %v1490_v44 }
 0x4e1   : > { %2206 = vmatpush3.bf16.msra.mxu1 %v2205_v45 }
 0x4e4   : > { %2093 = vmatmul.mubr.f32.vlgmr.msra.gmra.mrb[0].mxu1 %v1514_v46 }
 0x5b7   : > { %v1581_v47 = vpop.f32.mrb[0].mxu1 }
 0x5b8   : > { %1585 = vst [vmem:[#allocation17] sm:$0xff] %v1581_v47  ;;  %v2094_v48 = vpop.f32.mrb[1].mxu1 }
 0x5b9 PF: > { %p2275_p3 = scmp.eq.s32.totalorder %s2769_s0, 1  ;;  %s2676_s10 = smov [#allocation17]  }
 0x5ba   : > { %s1593_s11 = sshll.u32 %s2676_s10, 4  ;;  %s2677_s13 = smov [#allocation18]   ;;  %s1594_s11 = int_to_ptr.vmem [resolvable:$true] %s1593_s11 }
 0x5bb   : > { %s1603_s9 = sshll.u32 %s2677_s13, 4  ;;  %s2531_s15 = scalar_lea.vmem %s1594_s11, 128  ;;  %s3155_s9 = int_to_ptr.vmem [resolvable:$true] %s1603_s9 }
 0x5bc   : > { %p2532_p10 = scmp.ne.s32.totalorder %s1594_s11, %s2531_s15  ;;  %p2538_p12 = scmp.lt.s32.totalorder %s1594_s11, %s1594_s11 }
 0x5bd   : > { %p2539_p13 = scmp.lt.s32.totalorder %s2531_s15, %s2531_s15 }
 0x5be   : > { %p2533_p8 = pnand %p2532_p10, %p2275_p3 }
 0x5bf   : > { %p2540_p4 = por %p2539_p13, %p2538_p12 }
 0x5c0   : > { %p2534_p11 = pneg %p2533_p8 }
 0x5c2   : > { %p2541_p5 = pnand %p2540_p4, %p2534_p11 }
 0x5c4   : > { %2544 = shalt.err (!%p2541_p5)
}
 0x5c5   : > { %s3263_s27 = sld [smem:[#allocation28_spill]] }
 0x5cb   : > { %s2545_s23 = scalar_lea.hbm %s3263_s27, 128 }
 0x5cc   : > { %p2546_p2 = scmp.ne.s32.totalorder %s3263_s27, %s2545_s23  ;;  %p2551_p0 = scmp.lt.u32.totalorder %s2545_s23, %s3263_s27 }
 0x5ce   : > { %p2547_p6 = pnand %p2546_p2, %p2275_p3 }
 0x5d0   : > { %p2548_p9 = pneg %p2547_p6 }
 0x5d2   : > { %p2553_p7 = pnand %p2551_p0, %p2548_p9 }
 0x5d4   : > { %2556 = shalt.err (!%p2553_p7)
}
 0x5d5   : > { %2242 = dma.vmem_to_hbm [thread:$0]  (%p2275_p3), %s1594_s11, 128, %s3263_s27, [#allocation10]  }
 0x5d6   : > { %s2557_s30 = scalar_lea.vmem %s3155_s9, 2048  ;;  %p2564_p11 = scmp.lt.s32.totalorder %s3155_s9, %s3155_s9 }
 0x5d7   : > { %p2558_p1 = scmp.ne.s32.totalorder %s3155_s9, %s2557_s30  ;;  %p2565_p12 = scmp.lt.s32.totalorder %s2557_s30, %s2557_s30 }
 0x5d9   : > { %p2559_p10 = pnand %p2558_p1, %p2275_p3  ;;  %p2566_p13 = por %p2565_p12, %p2564_p11 }
 0x5db   : > { %p2560_p8 = pneg %p2559_p10 }
 0x5dd   : > { %p2567_p4 = pnand %p2566_p13, %p2560_p8 }
 0x5df   : > { %2570 = shalt.err (!%p2567_p4)
}
 0x5e0   : > { %s3264_s13 = sld [smem:[#allocation29_spill]] }
 0x5e6   : > { %s2571_s15 = scalar_lea.hbm %s3264_s13, 2048 }
 0x5e7   : > { %p2572_p5 = scmp.ne.s32.totalorder %s3264_s13, %s2571_s15  ;;  %p2577_p9 = scmp.lt.u32.totalorder %s2571_s15, %s3264_s13 }
 0x5e9   : > { %p2573_p2 = pnand %p2572_p5, %p2275_p3 }
 0x5eb   : > { %p2574_p6 = pneg %p2573_p2 }
 0x5ed   : > { %p2579_p0 = pnand %p2577_p9, %p2574_p6 }
 0x5ef   : > { %2582 = shalt.err (!%p2579_p0)
}
 0x5f0   : > { %s2678_s26 = smov 128   ;;  %s2679_s29 = smov 8  }
 0x5f1   : > { %2244 = dma.vmem_to_hbm [thread:$0]  (%p2275_p3), %s3155_s9, 2048, %s3264_s13, [#allocation19], %s2678_s26, %s2678_s26, %s2679_s29  }
 0x5f2   : > { %2628 = dma.done.wait (%p2275_p3), [#allocation10], 128  }
 0x5f3   : > { %2630 = vsyncadd (%p2275_p3), [#allocation10], 4294967168 }
 0x5f4   : > { %2632 = dma.done.wait (%p2275_p3), [#allocation19], 2048  }
 0x5f5   : > { %2634 = vsyncadd (%p2275_p3), [#allocation19], 4294965248 }
 0x5f6 PF: > { %s27_s20 = sadd.s32 1, %s2657_s20   ;;  %s3265_s15 = smov %s2641_s16 }
 0x5f7   : > { %p24_p7 = scmp.ge.s32.totalorder %s27_s20, 4   ;;  %s3266_s16 = smov %s2645_s17 }
 0x5f8   : > { %s3267_s17 = smov %s2915_s22  ;;  %s3268_s18 = smov %s2653_s19 }
 0x5f9   : > { %s3269_s19 = smov %s3271_s24  ;;  %26 = sbr.rel (!%p24_p7) target bundleno = 12 (0xc), region = 133 }
 0x600   :  { %1623 = vsyncpa [#allocation9], 1 }
 0x601   :  { %1625 = vsyncpa [#allocation9 + $0x1], 1 }
 0x602   :  { %1626 = vsyncpa [#allocation12], 1 }
 0x603   :  { %1627 = vsyncpa [#allocation16], 1 }
 0x604   :  { %1628 = vsyncpa [#allocation10], 1 }
 0x605   :  { %1630 = vsyncpa [#allocation10 + $0x1], 1 }
 0x606   :  { %1631 = vsyncpa [#allocation19], 1 }

</bundles_post_ra>
